<compile_context>
chip_gen: v5e
topology: v5e:2x2
jax: 0.10.0
libtpu: 0.0.40
codegen_flags: <defaults>
</compile_context>

<pallas_src>
import functools

import jax
import jax.numpy as jnp
from jax.experimental import pallas as pl
from jax.experimental.pallas import tpu as pltpu


def _round_up(x, m):
    return ((x + m - 1) // m) * m


# ------------------------------ Pallas kernel -------------------------------

def _rainbow_kernel(x_ref, w1_ref, b1_ref, w2_ref, b2_ref,
                    wh1_ref, bh1_ref, wa2_ref, ba2_ref, wv2_ref, bv2_ref,
                    atoms_ref, q_logits_ref, q_values_ref, *,
                    num_actions, num_atoms, head_hidden):
    """Fused body + dueling noisy heads + C51 softmax/Q for one batch block."""

    def dense(h, w_ref, b_ref, relu):
        # bf16 MXU matmul, f32 accumulation, f32 bias/activation.
        y = jnp.dot(h.astype(w_ref.dtype), w_ref[...],
                    preferred_element_type=jnp.float32) + b_ref[...]
        return jnp.maximum(y, 0.0) if relu else y

    x = x_ref[...].astype(jnp.float32)
    h = dense(x, w1_ref, b1_ref, relu=True)           # (bm, 128)
    h = dense(h, w2_ref, b2_ref, relu=True)           # (bm, 256)

    # Merged first noisy layer of both heads (same input) -> lane-dense N=512.
    hh = dense(h, wh1_ref, bh1_ref, relu=True)        # (bm, 512) = [adv | value]
    adv = dense(hh[:, :head_hidden], wa2_ref, ba2_ref, relu=False)   # (bm, A*Na)
    val = dense(hh[:, head_hidden:], wv2_ref, bv2_ref, relu=False)   # (bm, Na)

    # Dueling: mean over actions (static unrolled loop — A is tiny).
    mean_adv = adv[:, 0:num_atoms]
    for a in range(1, num_actions):
        mean_adv = mean_adv + adv[:, a * num_atoms:(a + 1) * num_atoms]
    mean_adv = mean_adv * (1.0 / num_actions)

    atoms = atoms_ref[...]                             # (1, Na) f32
    logits_cols = []
    qval_cols = []
    for a in range(num_actions):
        la = val + adv[:, a * num_atoms:(a + 1) * num_atoms] - mean_adv  # (bm, Na)
        logits_cols.append(la)
        # softmax over atoms + expectation under the atom support
        m = jnp.max(la, axis=-1, keepdims=True)
        e = jnp.exp(la - m)
        dist = e / jnp.sum(e, axis=-1, keepdims=True)
        qval_cols.append(jnp.sum(dist * atoms, axis=-1, keepdims=True))

    # Single full-block stores (outputs never leave VMEM piecemeal).
    q_logits_ref[...] = jnp.concatenate(logits_cols, axis=-1)
    q_values_ref[...] = jnp.concatenate(qval_cols, axis=-1)


# ------------------------------ JAX wrapper ---------------------------------

def rainbow_forward(params, x, atoms, *, num_actions, num_atoms, block_b=128):
    """x: (B, input_shape) f32 -> (q_logits (B, A, Na), q_values (B, A))."""
    B, D = x.shape
    AN = num_actions * num_atoms

    bm = min(block_b, _round_up(max(B, 1), 8))
    B_pad = _round_up(B, bm)
    if B_pad != B:
        x = jnp.pad(x, ((0, B_pad - B), (0, 0)))

    atoms2d = atoms.reshape(1, num_atoms).astype(jnp.float32)
    weights = (params['w1'], params['b1'], params['w2'], params['b2'],
               params['wh1'], params['bh1'], params['wa2'], params['ba2'],
               params['wv2'], params['bv2'], atoms2d)
    w_specs = [pl.BlockSpec(w.shape, lambda i: (0, 0)) for w in weights]

    flops = 2 * B_pad * (D * 128 + 128 * 256 + 256 * 512
                         + 256 * AN + 256 * num_atoms)
    bytes_accessed = sum(int(w.size) * int(w.dtype.itemsize) for w in weights)
    bytes_accessed += int(B_pad * D * 4 + B_pad * AN * 4 + B_pad * num_actions * 4)

    kernel = functools.partial(_rainbow_kernel,
                               num_actions=num_actions,
                               num_atoms=num_atoms,
                               head_hidden=256)

    q_logits_flat, q_values = pl.pallas_call(
        kernel,
        out_shape=(jax.ShapeDtypeStruct((B_pad, AN), jnp.float32),
                   jax.ShapeDtypeStruct((B_pad, num_actions), jnp.float32)),
        grid_spec=pltpu.PrefetchScalarGridSpec(
            num_scalar_prefetch=0,
            grid=(B_pad // bm,),
            in_specs=[pl.BlockSpec((bm, D), lambda i: (i, 0))] + w_specs,
            out_specs=(pl.BlockSpec((bm, AN), lambda i: (i, 0)),
                       pl.BlockSpec((bm, num_actions), lambda i: (i, 0)))),
        compiler_params=pltpu.CompilerParams(
            dimension_semantics=("parallel",)),
        cost_estimate=pl.CostEstimate(flops=flops,
                                      transcendentals=B_pad * AN,
                                      bytes_accessed=bytes_accessed),
    )(x, *weights)

    q_logits = q_logits_flat[:B].reshape(B, num_actions, num_atoms)
    return q_logits, q_values[:B]


# ------------------------------ parameters ----------------------------------

def init_params(key, input_shape, num_actions, num_atoms):
    ks = jax.random.split(key, 8)

    def linear_p(k, fi, fo):
        kw, kb = jax.random.split(k)
        bound = 1.0 / float(fi) ** 0.5
        w = jax.random.uniform(kw, (fi, fo), jnp.float32, -bound, bound)
        b = jax.random.uniform(kb, (1, fo), jnp.float32, -bound, bound)
        return w, b

    def noisy_p(k, fi, fo):
        # Factorized NoisyNet: effective W = mu + sigma * (f(eps_out) x f(eps_in)).
        kmw, kmb, kei, keo = jax.random.split(k, 4)
        bound = 1.0 / float(fi) ** 0.5
        sigma = 0.5 / float(fi) ** 0.5
        w_mu = jax.random.uniform(kmw, (fo, fi), jnp.float32, -bound, bound)
        b_mu = jax.random.uniform(kmb, (fo,), jnp.float32, -bound, bound)
        f = lambda v: jnp.sign(v) * jnp.sqrt(jnp.abs(v))
        eps_in = f(jax.random.normal(kei, (fi,), jnp.float32))
        eps_out = f(jax.random.normal(keo, (fo,), jnp.float32))
        w = w_mu + sigma * jnp.outer(eps_out, eps_in)
        b = b_mu + sigma * eps_out
        return w.T, b.reshape(1, fo)                   # stored (in, out)

    p = {}
    p['w1'], p['b1'] = linear_p(ks[0], input_shape, 128)
    p['w2'], p['b2'] = linear_p(ks[1], 128, 256)
    wa1, ba1 = noisy_p(ks[2], 256, 256)
    wv1, bv1 = noisy_p(ks[3], 256, 256)
    # Merge same-input first noisy layers of both heads -> one N=512 matmul.
    p['wh1'] = jnp.concatenate([wa1, wv1], axis=1)
    p['bh1'] = jnp.concatenate([ba1, bv1], axis=1)
    p['wa2'], p['ba2'] = noisy_p(ks[4], 256, num_actions * num_atoms)
    p['wv2'], p['bv2'] = noisy_p(ks[5], 256, num_atoms)

    # bf16 matmul operands (f32 accumulation in-kernel) to halve weight DMA.
    for name in ('w1', 'w2', 'wh1', 'wa2', 'wv2'):
        p[name] = p[name].astype(jnp.bfloat16)
    return p


# --------------------------------- main --------------------------------------

if __name__ == "__main__":
    B = 2
    input_shape = 16
    num_actions = 6
    num_atoms = 51

    key = jax.random.PRNGKey(0)
    k_params, k_x = jax.random.split(key)

    params = init_params(k_params, input_shape, num_actions, num_atoms)
    atoms = jnp.linspace(-10.0, 10.0, num_atoms, dtype=jnp.float32)
    x = jax.random.normal(k_x, (B, input_shape), dtype=jnp.float32)

    q_logits, q_values = rainbow_forward(params, x, atoms,
                                         num_actions=num_actions,
                                         num_atoms=num_atoms)
    jax.block_until_ready((q_logits, q_values))

    assert q_logits.shape == (B, num_actions, num_atoms)
    assert q_values.shape == (B, num_actions)
    assert bool(jnp.all(jnp.isfinite(q_logits)))
    assert bool(jnp.all(jnp.isfinite(q_values)))
    print("KERNEL_OK")
</pallas_src>

<mosaic_0001>
module attributes {stable_mosaic.version = 11 : i64} {
  func.func @_rainbow_kernel(%arg0: i32, %arg1: memref<8x16xf32, #tpu.memory_space<vmem>>, %arg2: memref<16x128xbf16, #tpu.memory_space<vmem>>, %arg3: memref<1x128xf32, #tpu.memory_space<vmem>>, %arg4: memref<128x256xbf16, #tpu.memory_space<vmem>>, %arg5: memref<1x256xf32, #tpu.memory_space<vmem>>, %arg6: memref<256x512xbf16, #tpu.memory_space<vmem>>, %arg7: memref<1x512xf32, #tpu.memory_space<vmem>>, %arg8: memref<256x306xbf16, #tpu.memory_space<vmem>>, %arg9: memref<1x306xf32, #tpu.memory_space<vmem>>, %arg10: memref<256x51xbf16, #tpu.memory_space<vmem>>, %arg11: memref<1x51xf32, #tpu.memory_space<vmem>>, %arg12: memref<1x51xf32, #tpu.memory_space<vmem>>, %arg13: memref<8x306xf32, #tpu.memory_space<vmem>>, %arg14: memref<8x6xf32, #tpu.memory_space<vmem>>) attributes {dimension_semantics = [#tpu.dimension_semantics<parallel>], iteration_bounds = array<i64: 1>, scalar_prefetch = 0 : i64, scratch_operands = 0 : i64, tpu.core_type = #tpu.core_type<tc>, window_params = [{transform_indices = @transform_0, window_bounds = array<i64: 8, 16>}, {pipeline_mode = #tpu.pipeline_mode<synchronous>, transform_indices = @transform_1, window_bounds = array<i64: 16, 128>}, {pipeline_mode = #tpu.pipeline_mode<synchronous>, transform_indices = @transform_2, window_bounds = array<i64: 1, 128>}, {pipeline_mode = #tpu.pipeline_mode<synchronous>, transform_indices = @transform_3, window_bounds = array<i64: 128, 256>}, {pipeline_mode = #tpu.pipeline_mode<synchronous>, transform_indices = @transform_4, window_bounds = array<i64: 1, 256>}, {pipeline_mode = #tpu.pipeline_mode<synchronous>, transform_indices = @transform_5, window_bounds = array<i64: 256, 512>}, {pipeline_mode = #tpu.pipeline_mode<synchronous>, transform_indices = @transform_6, window_bounds = array<i64: 1, 512>}, {pipeline_mode = #tpu.pipeline_mode<synchronous>, transform_indices = @transform_7, window_bounds = array<i64: 256, 306>}, {pipeline_mode = #tpu.pipeline_mode<synchronous>, transform_indices = @transform_8, window_bounds = array<i64: 1, 306>}, {pipeline_mode = #tpu.pipeline_mode<synchronous>, transform_indices = @transform_9, window_bounds = array<i64: 256, 51>}, {pipeline_mode = #tpu.pipeline_mode<synchronous>, transform_indices = @transform_10, window_bounds = array<i64: 1, 51>}, {pipeline_mode = #tpu.pipeline_mode<synchronous>, transform_indices = @transform_11, window_bounds = array<i64: 1, 51>}, {transform_indices = @transform_12, window_bounds = array<i64: 8, 306>}, {transform_indices = @transform_13, window_bounds = array<i64: 8, 6>}]} {
    %c0 = arith.constant 0 : index
    %c0_0 = arith.constant 0 : index
    %0 = vector.load %arg1[%c0, %c0_0] : memref<8x16xf32, #tpu.memory_space<vmem>>, vector<8x16xf32>
    %1 = arith.truncf %0 : vector<8x16xf32> to vector<8x16xbf16>
    %c0_1 = arith.constant 0 : index
    %c0_2 = arith.constant 0 : index
    %2 = vector.load %arg2[%c0_1, %c0_2] : memref<16x128xbf16, #tpu.memory_space<vmem>>, vector<16x128xbf16>
    %cst = arith.constant dense<0.000000e+00> : vector<8x128xf32>
    %3 = tpu.matmul %1, %2, %cst {dimension_numbers = #tpu.dot_dimension_numbers<[1], [0], [0], [1], [0, 0, 1, 1], [], []>} : vector<8x16xbf16>, vector<16x128xbf16>, vector<8x128xf32> -> vector<8x128xf32>
    %c0_3 = arith.constant 0 : index
    %c0_4 = arith.constant 0 : index
    %4 = vector.load %arg3[%c0_3, %c0_4] : memref<1x128xf32, #tpu.memory_space<vmem>>, vector<1x128xf32>
    %5 = vector.broadcast %4 : vector<1x128xf32> to vector<8x128xf32>
    %6 = arith.addf %3, %5 : vector<8x128xf32>
    %cst_5 = arith.constant 0.000000e+00 : f32
    %7 = vector.broadcast %cst_5 : f32 to vector<8x128xf32>
    %8 = arith.maximumf %6, %7 : vector<8x128xf32>
    %9 = arith.truncf %8 : vector<8x128xf32> to vector<8x128xbf16>
    %c0_6 = arith.constant 0 : index
    %c0_7 = arith.constant 0 : index
    %10 = vector.load %arg4[%c0_6, %c0_7] : memref<128x256xbf16, #tpu.memory_space<vmem>>, vector<128x256xbf16>
    %cst_8 = arith.constant dense<0.000000e+00> : vector<8x256xf32>
    %11 = tpu.matmul %9, %10, %cst_8 {dimension_numbers = #tpu.dot_dimension_numbers<[1], [0], [0], [1], [0, 0, 1, 1], [], []>} : vector<8x128xbf16>, vector<128x256xbf16>, vector<8x256xf32> -> vector<8x256xf32>
    %c0_9 = arith.constant 0 : index
    %c0_10 = arith.constant 0 : index
    %12 = vector.load %arg5[%c0_9, %c0_10] : memref<1x256xf32, #tpu.memory_space<vmem>>, vector<1x256xf32>
    %13 = vector.broadcast %12 : vector<1x256xf32> to vector<8x256xf32>
    %14 = arith.addf %11, %13 : vector<8x256xf32>
    %cst_11 = arith.constant 0.000000e+00 : f32
    %15 = vector.broadcast %cst_11 : f32 to vector<8x256xf32>
    %16 = arith.maximumf %14, %15 : vector<8x256xf32>
    %17 = arith.truncf %16 : vector<8x256xf32> to vector<8x256xbf16>
    %c0_12 = arith.constant 0 : index
    %c0_13 = arith.constant 0 : index
    %18 = vector.load %arg6[%c0_12, %c0_13] : memref<256x512xbf16, #tpu.memory_space<vmem>>, vector<256x512xbf16>
    %cst_14 = arith.constant dense<0.000000e+00> : vector<8x512xf32>
    %19 = tpu.matmul %17, %18, %cst_14 {dimension_numbers = #tpu.dot_dimension_numbers<[1], [0], [0], [1], [0, 0, 1, 1], [], []>} : vector<8x256xbf16>, vector<256x512xbf16>, vector<8x512xf32> -> vector<8x512xf32>
    %c0_15 = arith.constant 0 : index
    %c0_16 = arith.constant 0 : index
    %20 = vector.load %arg7[%c0_15, %c0_16] : memref<1x512xf32, #tpu.memory_space<vmem>>, vector<1x512xf32>
    %21 = vector.broadcast %20 : vector<1x512xf32> to vector<8x512xf32>
    %22 = arith.addf %19, %21 : vector<8x512xf32>
    %cst_17 = arith.constant 0.000000e+00 : f32
    %23 = vector.broadcast %cst_17 : f32 to vector<8x512xf32>
    %24 = arith.maximumf %22, %23 : vector<8x512xf32>
    %25 = vector.extract_strided_slice %24 {offsets = [0, 0], sizes = [8, 256], strides = [1, 1]} : vector<8x512xf32> to vector<8x256xf32>
    %26 = arith.truncf %25 : vector<8x256xf32> to vector<8x256xbf16>
    %c0_18 = arith.constant 0 : index
    %c0_19 = arith.constant 0 : index
    %27 = vector.load %arg8[%c0_18, %c0_19] : memref<256x306xbf16, #tpu.memory_space<vmem>>, vector<256x306xbf16>
    %cst_20 = arith.constant dense<0.000000e+00> : vector<8x306xf32>
    %28 = tpu.matmul %26, %27, %cst_20 {dimension_numbers = #tpu.dot_dimension_numbers<[1], [0], [0], [1], [0, 0, 1, 1], [], []>} : vector<8x256xbf16>, vector<256x306xbf16>, vector<8x306xf32> -> vector<8x306xf32>
    %c0_21 = arith.constant 0 : index
    %c0_22 = arith.constant 0 : index
    %29 = vector.load %arg9[%c0_21, %c0_22] : memref<1x306xf32, #tpu.memory_space<vmem>>, vector<1x306xf32>
    %30 = vector.broadcast %29 : vector<1x306xf32> to vector<8x306xf32>
    %31 = arith.addf %28, %30 : vector<8x306xf32>
    %32 = vector.extract_strided_slice %24 {offsets = [0, 256], sizes = [8, 256], strides = [1, 1]} : vector<8x512xf32> to vector<8x256xf32>
    %33 = arith.truncf %32 : vector<8x256xf32> to vector<8x256xbf16>
    %c0_23 = arith.constant 0 : index
    %c0_24 = arith.constant 0 : index
    %34 = vector.load %arg10[%c0_23, %c0_24] : memref<256x51xbf16, #tpu.memory_space<vmem>>, vector<256x51xbf16>
    %cst_25 = arith.constant dense<0.000000e+00> : vector<8x51xf32>
    %35 = tpu.matmul %33, %34, %cst_25 {dimension_numbers = #tpu.dot_dimension_numbers<[1], [0], [0], [1], [0, 0, 1, 1], [], []>} : vector<8x256xbf16>, vector<256x51xbf16>, vector<8x51xf32> -> vector<8x51xf32>
    %c0_26 = arith.constant 0 : index
    %c0_27 = arith.constant 0 : index
    %36 = vector.load %arg11[%c0_26, %c0_27] : memref<1x51xf32, #tpu.memory_space<vmem>>, vector<1x51xf32>
    %37 = vector.broadcast %36 : vector<1x51xf32> to vector<8x51xf32>
    %38 = arith.addf %35, %37 : vector<8x51xf32>
    %39 = vector.extract_strided_slice %31 {offsets = [0, 0], sizes = [8, 51], strides = [1, 1]} : vector<8x306xf32> to vector<8x51xf32>
    %40 = vector.extract_strided_slice %31 {offsets = [0, 51], sizes = [8, 51], strides = [1, 1]} : vector<8x306xf32> to vector<8x51xf32>
    %41 = arith.addf %39, %40 : vector<8x51xf32>
    %42 = vector.extract_strided_slice %31 {offsets = [0, 102], sizes = [8, 51], strides = [1, 1]} : vector<8x306xf32> to vector<8x51xf32>
    %43 = arith.addf %41, %42 : vector<8x51xf32>
    %44 = vector.extract_strided_slice %31 {offsets = [0, 153], sizes = [8, 51], strides = [1, 1]} : vector<8x306xf32> to vector<8x51xf32>
    %45 = arith.addf %43, %44 : vector<8x51xf32>
    %46 = vector.extract_strided_slice %31 {offsets = [0, 204], sizes = [8, 51], strides = [1, 1]} : vector<8x306xf32> to vector<8x51xf32>
    %47 = arith.addf %45, %46 : vector<8x51xf32>
    %48 = vector.extract_strided_slice %31 {offsets = [0, 255], sizes = [8, 51], strides = [1, 1]} : vector<8x306xf32> to vector<8x51xf32>
    %49 = arith.addf %47, %48 : vector<8x51xf32>
    %cst_28 = arith.constant 0.166666672 : f32
    %50 = vector.broadcast %cst_28 : f32 to vector<8x51xf32>
    %51 = arith.mulf %49, %50 : vector<8x51xf32>
    %c0_29 = arith.constant 0 : index
    %c0_30 = arith.constant 0 : index
    %52 = vector.load %arg12[%c0_29, %c0_30] : memref<1x51xf32, #tpu.memory_space<vmem>>, vector<1x51xf32>
    %53 = vector.extract_strided_slice %31 {offsets = [0, 0], sizes = [8, 51], strides = [1, 1]} : vector<8x306xf32> to vector<8x51xf32>
    %54 = arith.addf %38, %53 : vector<8x51xf32>
    %55 = arith.subf %54, %51 : vector<8x51xf32>
    %cst_31 = arith.constant dense<0xFF800000> : vector<8xf32>
    %56 = vector.multi_reduction <maximumf>, %55, %cst_31 [1] : vector<8x51xf32> to vector<8xf32>
    %57 = vector.shape_cast %56 : vector<8xf32> to vector<8x1xf32>
    %58 = vector.broadcast %57 : vector<8x1xf32> to vector<8x51xf32>
    %59 = arith.subf %55, %58 : vector<8x51xf32>
    %60 = math.exp %59 : vector<8x51xf32>
    %cst_32 = arith.constant dense<0.000000e+00> : vector<8xf32>
    %61 = vector.multi_reduction <add>, %60, %cst_32 [1] : vector<8x51xf32> to vector<8xf32>
    %62 = vector.shape_cast %61 : vector<8xf32> to vector<8x1xf32>
    %63 = vector.broadcast %62 : vector<8x1xf32> to vector<8x51xf32>
    %64 = arith.divf %60, %63 : vector<8x51xf32>
    %65 = vector.broadcast %52 : vector<1x51xf32> to vector<8x51xf32>
    %66 = arith.mulf %64, %65 : vector<8x51xf32>
    %cst_33 = arith.constant dense<0.000000e+00> : vector<8xf32>
    %67 = vector.multi_reduction <add>, %66, %cst_33 [1] : vector<8x51xf32> to vector<8xf32>
    %68 = vector.shape_cast %67 : vector<8xf32> to vector<8x1xf32>
    %69 = vector.extract_strided_slice %31 {offsets = [0, 51], sizes = [8, 51], strides = [1, 1]} : vector<8x306xf32> to vector<8x51xf32>
    %70 = arith.addf %38, %69 : vector<8x51xf32>
    %71 = arith.subf %70, %51 : vector<8x51xf32>
    %cst_34 = arith.constant dense<0xFF800000> : vector<8xf32>
    %72 = vector.multi_reduction <maximumf>, %71, %cst_34 [1] : vector<8x51xf32> to vector<8xf32>
    %73 = vector.shape_cast %72 : vector<8xf32> to vector<8x1xf32>
    %74 = vector.broadcast %73 : vector<8x1xf32> to vector<8x51xf32>
    %75 = arith.subf %71, %74 : vector<8x51xf32>
    %76 = math.exp %75 : vector<8x51xf32>
    %cst_35 = arith.constant dense<0.000000e+00> : vector<8xf32>
    %77 = vector.multi_reduction <add>, %76, %cst_35 [1] : vector<8x51xf32> to vector<8xf32>
    %78 = vector.shape_cast %77 : vector<8xf32> to vector<8x1xf32>
    %79 = vector.broadcast %78 : vector<8x1xf32> to vector<8x51xf32>
    %80 = arith.divf %76, %79 : vector<8x51xf32>
    %81 = vector.broadcast %52 : vector<1x51xf32> to vector<8x51xf32>
    %82 = arith.mulf %80, %81 : vector<8x51xf32>
    %cst_36 = arith.constant dense<0.000000e+00> : vector<8xf32>
    %83 = vector.multi_reduction <add>, %82, %cst_36 [1] : vector<8x51xf32> to vector<8xf32>
    %84 = vector.shape_cast %83 : vector<8xf32> to vector<8x1xf32>
    %85 = vector.extract_strided_slice %31 {offsets = [0, 102], sizes = [8, 51], strides = [1, 1]} : vector<8x306xf32> to vector<8x51xf32>
    %86 = arith.addf %38, %85 : vector<8x51xf32>
    %87 = arith.subf %86, %51 : vector<8x51xf32>
    %cst_37 = arith.constant dense<0xFF800000> : vector<8xf32>
    %88 = vector.multi_reduction <maximumf>, %87, %cst_37 [1] : vector<8x51xf32> to vector<8xf32>
    %89 = vector.shape_cast %88 : vector<8xf32> to vector<8x1xf32>
    %90 = vector.broadcast %89 : vector<8x1xf32> to vector<8x51xf32>
    %91 = arith.subf %87, %90 : vector<8x51xf32>
    %92 = math.exp %91 : vector<8x51xf32>
    %cst_38 = arith.constant dense<0.000000e+00> : vector<8xf32>
    %93 = vector.multi_reduction <add>, %92, %cst_38 [1] : vector<8x51xf32> to vector<8xf32>
    %94 = vector.shape_cast %93 : vector<8xf32> to vector<8x1xf32>
    %95 = vector.broadcast %94 : vector<8x1xf32> to vector<8x51xf32>
    %96 = arith.divf %92, %95 : vector<8x51xf32>
    %97 = vector.broadcast %52 : vector<1x51xf32> to vector<8x51xf32>
    %98 = arith.mulf %96, %97 : vector<8x51xf32>
    %cst_39 = arith.constant dense<0.000000e+00> : vector<8xf32>
    %99 = vector.multi_reduction <add>, %98, %cst_39 [1] : vector<8x51xf32> to vector<8xf32>
    %100 = vector.shape_cast %99 : vector<8xf32> to vector<8x1xf32>
    %101 = vector.extract_strided_slice %31 {offsets = [0, 153], sizes = [8, 51], strides = [1, 1]} : vector<8x306xf32> to vector<8x51xf32>
    %102 = arith.addf %38, %101 : vector<8x51xf32>
    %103 = arith.subf %102, %51 : vector<8x51xf32>
    %cst_40 = arith.constant dense<0xFF800000> : vector<8xf32>
    %104 = vector.multi_reduction <maximumf>, %103, %cst_40 [1] : vector<8x51xf32> to vector<8xf32>
    %105 = vector.shape_cast %104 : vector<8xf32> to vector<8x1xf32>
    %106 = vector.broadcast %105 : vector<8x1xf32> to vector<8x51xf32>
    %107 = arith.subf %103, %106 : vector<8x51xf32>
    %108 = math.exp %107 : vector<8x51xf32>
    %cst_41 = arith.constant dense<0.000000e+00> : vector<8xf32>
    %109 = vector.multi_reduction <add>, %108, %cst_41 [1] : vector<8x51xf32> to vector<8xf32>
    %110 = vector.shape_cast %109 : vector<8xf32> to vector<8x1xf32>
    %111 = vector.broadcast %110 : vector<8x1xf32> to vector<8x51xf32>
    %112 = arith.divf %108, %111 : vector<8x51xf32>
    %113 = vector.broadcast %52 : vector<1x51xf32> to vector<8x51xf32>
    %114 = arith.mulf %112, %113 : vector<8x51xf32>
    %cst_42 = arith.constant dense<0.000000e+00> : vector<8xf32>
    %115 = vector.multi_reduction <add>, %114, %cst_42 [1] : vector<8x51xf32> to vector<8xf32>
    %116 = vector.shape_cast %115 : vector<8xf32> to vector<8x1xf32>
    %117 = vector.extract_strided_slice %31 {offsets = [0, 204], sizes = [8, 51], strides = [1, 1]} : vector<8x306xf32> to vector<8x51xf32>
    %118 = arith.addf %38, %117 : vector<8x51xf32>
    %119 = arith.subf %118, %51 : vector<8x51xf32>
    %cst_43 = arith.constant dense<0xFF800000> : vector<8xf32>
    %120 = vector.multi_reduction <maximumf>, %119, %cst_43 [1] : vector<8x51xf32> to vector<8xf32>
    %121 = vector.shape_cast %120 : vector<8xf32> to vector<8x1xf32>
    %122 = vector.broadcast %121 : vector<8x1xf32> to vector<8x51xf32>
    %123 = arith.subf %119, %122 : vector<8x51xf32>
    %124 = math.exp %123 : vector<8x51xf32>
    %cst_44 = arith.constant dense<0.000000e+00> : vector<8xf32>
    %125 = vector.multi_reduction <add>, %124, %cst_44 [1] : vector<8x51xf32> to vector<8xf32>
    %126 = vector.shape_cast %125 : vector<8xf32> to vector<8x1xf32>
    %127 = vector.broadcast %126 : vector<8x1xf32> to vector<8x51xf32>
    %128 = arith.divf %124, %127 : vector<8x51xf32>
    %129 = vector.broadcast %52 : vector<1x51xf32> to vector<8x51xf32>
    %130 = arith.mulf %128, %129 : vector<8x51xf32>
    %cst_45 = arith.constant dense<0.000000e+00> : vector<8xf32>
    %131 = vector.multi_reduction <add>, %130, %cst_45 [1] : vector<8x51xf32> to vector<8xf32>
    %132 = vector.shape_cast %131 : vector<8xf32> to vector<8x1xf32>
    %133 = vector.extract_strided_slice %31 {offsets = [0, 255], sizes = [8, 51], strides = [1, 1]} : vector<8x306xf32> to vector<8x51xf32>
    %134 = arith.addf %38, %133 : vector<8x51xf32>
    %135 = arith.subf %134, %51 : vector<8x51xf32>
    %cst_46 = arith.constant dense<0xFF800000> : vector<8xf32>
    %136 = vector.multi_reduction <maximumf>, %135, %cst_46 [1] : vector<8x51xf32> to vector<8xf32>
    %137 = vector.shape_cast %136 : vector<8xf32> to vector<8x1xf32>
    %138 = vector.broadcast %137 : vector<8x1xf32> to vector<8x51xf32>
    %139 = arith.subf %135, %138 : vector<8x51xf32>
    %140 = math.exp %139 : vector<8x51xf32>
    %cst_47 = arith.constant dense<0.000000e+00> : vector<8xf32>
    %141 = vector.multi_reduction <add>, %140, %cst_47 [1] : vector<8x51xf32> to vector<8xf32>
    %142 = vector.shape_cast %141 : vector<8xf32> to vector<8x1xf32>
    %143 = vector.broadcast %142 : vector<8x1xf32> to vector<8x51xf32>
    %144 = arith.divf %140, %143 : vector<8x51xf32>
    %145 = vector.broadcast %52 : vector<1x51xf32> to vector<8x51xf32>
    %146 = arith.mulf %144, %145 : vector<8x51xf32>
    %cst_48 = arith.constant dense<0.000000e+00> : vector<8xf32>
    %147 = vector.multi_reduction <add>, %146, %cst_48 [1] : vector<8x51xf32> to vector<8xf32>
    %148 = vector.shape_cast %147 : vector<8xf32> to vector<8x1xf32>
    %149 = tpu.concatenate %55, %71, %87, %103, %119, %135 in 1 : vector<8x51xf32>, vector<8x51xf32>, vector<8x51xf32>, vector<8x51xf32>, vector<8x51xf32>, vector<8x51xf32> -> vector<8x306xf32>
    %c0_49 = arith.constant 0 : index
    %c0_50 = arith.constant 0 : index
    %150 = vector.load %arg13[%c0_49, %c0_50] : memref<8x306xf32, #tpu.memory_space<vmem>>, vector<8x306xf32>
    tpu.vector_store %arg13[%c0_49, %c0_50], %149 {strides = array<i32>} : memref<8x306xf32, #tpu.memory_space<vmem>>, vector<8x306xf32>,
    %151 = tpu.concatenate %68, %84, %100, %116, %132, %148 in 1 : vector<8x1xf32>, vector<8x1xf32>, vector<8x1xf32>, vector<8x1xf32>, vector<8x1xf32>, vector<8x1xf32> -> vector<8x6xf32>
    %c0_51 = arith.constant 0 : index
    %c0_52 = arith.constant 0 : index
    %152 = vector.load %arg14[%c0_51, %c0_52] : memref<8x6xf32, #tpu.memory_space<vmem>>, vector<8x6xf32>
    tpu.vector_store %arg14[%c0_51, %c0_52], %151 {strides = array<i32>} : memref<8x6xf32, #tpu.memory_space<vmem>>, vector<8x6xf32>,
    return
  }
  func.func @transform_0(%arg0: i32) -> (i32, i32) {
    %c0_i32 = arith.constant 0 : i32
    %c0_i32_0 = arith.constant 0 : i32
    return %arg0, %c0_i32 : i32, i32
  }
  func.func @transform_1(%arg0: i32) -> (i32, i32) {
    %c0_i32 = arith.constant 0 : i32
    %c0_i32_0 = arith.constant 0 : i32
    %c0_i32_1 = arith.constant 0 : i32
    return %c0_i32, %c0_i32_0 : i32, i32
  }
  func.func @transform_2(%arg0: i32) -> (i32, i32) {
    %c0_i32 = arith.constant 0 : i32
    %c0_i32_0 = arith.constant 0 : i32
    %c0_i32_1 = arith.constant 0 : i32
    return %c0_i32, %c0_i32_0 : i32, i32
  }
  func.func @transform_3(%arg0: i32) -> (i32, i32) {
    %c0_i32 = arith.constant 0 : i32
    %c0_i32_0 = arith.constant 0 : i32
    %c0_i32_1 = arith.constant 0 : i32
    return %c0_i32, %c0_i32_0 : i32, i32
  }
  func.func @transform_4(%arg0: i32) -> (i32, i32) {
    %c0_i32 = arith.constant 0 : i32
    %c0_i32_0 = arith.constant 0 : i32
    %c0_i32_1 = arith.constant 0 : i32
    return %c0_i32, %c0_i32_0 : i32, i32
  }
  func.func @transform_5(%arg0: i32) -> (i32, i32) {
    %c0_i32 = arith.constant 0 : i32
    %c0_i32_0 = arith.constant 0 : i32
    %c0_i32_1 = arith.constant 0 : i32
    return %c0_i32, %c0_i32_0 : i32, i32
  }
  func.func @transform_6(%arg0: i32) -> (i32, i32) {
    %c0_i32 = arith.constant 0 : i32
    %c0_i32_0 = arith.constant 0 : i32
    %c0_i32_1 = arith.constant 0 : i32
    return %c0_i32, %c0_i32_0 : i32, i32
  }
  func.func @transform_7(%arg0: i32) -> (i32, i32) {
    %c0_i32 = arith.constant 0 : i32
    %c0_i32_0 = arith.constant 0 : i32
    %c0_i32_1 = arith.constant 0 : i32
    return %c0_i32, %c0_i32_0 : i32, i32
  }
  func.func @transform_8(%arg0: i32) -> (i32, i32) {
    %c0_i32 = arith.constant 0 : i32
    %c0_i32_0 = arith.constant 0 : i32
    %c0_i32_1 = arith.constant 0 : i32
    return %c0_i32, %c0_i32_0 : i32, i32
  }
  func.func @transform_9(%arg0: i32) -> (i32, i32) {
    %c0_i32 = arith.constant 0 : i32
    %c0_i32_0 = arith.constant 0 : i32
    %c0_i32_1 = arith.constant 0 : i32
    return %c0_i32, %c0_i32_0 : i32, i32
  }
  func.func @transform_10(%arg0: i32) -> (i32, i32) {
    %c0_i32 = arith.constant 0 : i32
    %c0_i32_0 = arith.constant 0 : i32
    %c0_i32_1 = arith.constant 0 : i32
    return %c0_i32, %c0_i32_0 : i32, i32
  }
  func.func @transform_11(%arg0: i32) -> (i32, i32) {
    %c0_i32 = arith.constant 0 : i32
    %c0_i32_0 = arith.constant 0 : i32
    %c0_i32_1 = arith.constant 0 : i32
    return %c0_i32, %c0_i32_0 : i32, i32
  }
  func.func @transform_12(%arg0: i32) -> (i32, i32) {
    %c0_i32 = arith.constant 0 : i32
    %c0_i32_0 = arith.constant 0 : i32
    return %arg0, %c0_i32 : i32, i32
  }
  func.func @transform_13(%arg0: i32) -> (i32, i32) {
    %c0_i32 = arith.constant 0 : i32
    %c0_i32_0 = arith.constant 0 : i32
    return %arg0, %c0_i32 : i32, i32
  }
}

</mosaic_0001>

<bundles_post_ra>
// kernel: tpu_custom_call.1
= control target key start
LH: loop header
LB: loop body
LE: loop exit
PB: predicated region body
PF: predicated region fallthrough
CT: control target
= control target key end

     0   :  { %19 = vsyncpa [#allocation3], 0  ;;  %vm60_vm0 = vcmask 130048   ;;  %s3475_s0 = inlined_call_operand.vmem [shape: f32[8,16], index: 0, kind: input, shape index: {}]   ;;  %s3476_s1 = inlined_call_operand.vmem [shape: bf16[16,128], index: 1, kind: input, shape index: {}]   ;;  %s3477_s2 = inlined_call_operand.vmem [shape: f32[1,128], index: 2, kind: input, shape index: {}]   ;;  %s3478_s3 = inlined_call_operand.vmem [shape: bf16[128,256], index: 3, kind: input, shape index: {}]   ;;  %s3479_s4 = inlined_call_operand.vmem [shape: f32[1,256], index: 4, kind: input, shape index: {}]   ;;  %s3480_s5 = inlined_call_operand.vmem [shape: bf16[256,512], index: 5, kind: input, shape index: {}]   ;;  %s3481_s6 = inlined_call_operand.vmem [shape: f32[1,512], index: 6, kind: input, shape index: {}]   ;;  %s3482_s7 = inlined_call_operand.vmem [shape: bf16[256,306], index: 7, kind: input, shape index: {}]   ;;  %s3483_s8 = inlined_call_operand.vmem [shape: f32[1,306], index: 8, kind: input, shape index: {}]   ;;  %s3484_s9 = inlined_call_operand.vmem [shape: bf16[256,51], index: 9, kind: input, shape index: {}]   ;;  %s3485_s10 = inlined_call_operand.vmem [shape: f32[1,51], index: 10, kind: input, shape index: {}]   ;;  %s3486_s11 = inlined_call_operand.vmem [shape: f32[1,51], index: 11, kind: input, shape index: {}]   ;;  %s3487_s12 = inlined_call_operand.hbm [shape: f32[8,306], index: 12, kind: output, shape index: {0}]   ;;  %s3488_s13 = inlined_call_operand.hbm [shape: f32[8,6], index: 13, kind: output, shape index: {1}]  }
   0x1   :  { %v2155_v0 = vld [vmem:[%s3476_s1] sm:$0xff]  ;;  %v1637_v2 = vld [vmem:[%s3478_s3 + $0x70] sm:$0xf]  ;;  %v2171_v4 = vld [vmem:[%s3478_s3 + $0x74] sm:$0xf0] }
   0x2   :  { %v46_v1 = vld [vmem:[%s3475_s0] sm:$0xff]  ;;  %v2170_v5 = vld [vmem:[%s3478_s3 + $0x74] sm:$0xf]  ;;  %v1639_v6 = vld [vmem:[%s3478_s3 + $0x78] sm:$0xf0]  ;;  %71 = vmatpush.bf16.msra.mxu0 %v2155_v0  ;;  %v1638_v7 = vor.u32 %v2171_v4, %v1637_v2 }
   0x3   :  { %v47_v3 = vpack.c.bf16 %v46_v1, %v46_v1  ;;  %v1642_v8 = vor.u32 %v2170_v5, %v1639_v6  ;;  %v1629_v9 = vld [vmem:[%s3478_s3 + $0x60] sm:$0xf]  ;;  %v2169_v10 = vld [vmem:[%s3478_s3 + $0x64] sm:$0xf0]  ;;  %v2168_v11 = vld [vmem:[%s3478_s3 + $0x64] sm:$0xf] }
   0x4   :  { %v1631_v12 = vld [vmem:[%s3478_s3 + $0x68] sm:$0xf0]  ;;  %181 = vmatpush.bf16.msra.mxu1 %v1638_v7  ;;  %v1630_v13 = vor.u32 %v2169_v10, %v1629_v9  ;;  %v1621_v15 = vld [vmem:[%s3478_s3 + $0x50] sm:$0xf]  ;;  %v2167_v16 = vld [vmem:[%s3478_s3 + $0x54] sm:$0xf0] }
   0x5   :  { %194 = vmatpush.bf16.msra.mxu2 %v1642_v8  ;;  %v1634_v14 = vor.u32 %v2168_v11, %v1631_v12  ;;  %1578 = vmatmul.msk.bf16.vlgmr.msra.gmra.mxu0 %vm60_vm0, %v47_v3  ;;  %v2166_v17 = vld [vmem:[%s3478_s3 + $0x54] sm:$0xf]  ;;  %v1623_v18 = vld [vmem:[%s3478_s3 + $0x58] sm:$0xf0]  ;;  %v1613_v19 = vld [vmem:[%s3478_s3 + $0x40] sm:$0xf]  ;;  %v1622_v20 = vor.u32 %v2167_v16, %v1621_v15 }
   0x6   :  { %v1626_v21 = vor.u32 %v2166_v17, %v1623_v18  ;;  %v2165_v22 = vld [vmem:[%s3478_s3 + $0x44] sm:$0xf0]  ;;  %v2164_v23 = vld [vmem:[%s3478_s3 + $0x44] sm:$0xf]  ;;  %v1615_v24 = vld [vmem:[%s3478_s3 + $0x48] sm:$0xf0] }
   0x8   :  { %182 = vmatpush.bf16.msra.mxu1 %v1630_v13 }
   0x9   :  { %195 = vmatpush.bf16.msra.mxu2 %v1634_v14 }
   0xa   :  { %20 = vsyncpa [#allocation5], 0  ;;  %v1614_v25 = vor.u32 %v2165_v22, %v1613_v19  ;;  %v1618_v26 = vor.u32 %v2164_v23, %v1615_v24  ;;  %v1605_v27 = vld [vmem:[%s3478_s3 + $0x30] sm:$0xf]  ;;  %v2163_v28 = vld [vmem:[%s3478_s3 + $0x34] sm:$0xf0] }
   0xb   :  { %v2162_v29 = vld [vmem:[%s3478_s3 + $0x34] sm:$0xf]  ;;  %v1607_v30 = vld [vmem:[%s3478_s3 + $0x38] sm:$0xf0]  ;;  %v1606_v31 = vor.u32 %v2163_v28, %v1605_v27  ;;  %v1597_v33 = vld [vmem:[%s3478_s3 + $0x20] sm:$0xf] }
   0xc   :  { %183 = vmatpush.bf16.msra.mxu1 %v1622_v20  ;;  %v1610_v32 = vor.u32 %v2162_v29, %v1607_v30  ;;  %v2161_v34 = vld [vmem:[%s3478_s3 + $0x24] sm:$0xf0]  ;;  %v2160_v35 = vld [vmem:[%s3478_s3 + $0x24] sm:$0xf]  ;;  %v1599_v36 = vld [vmem:[%s3478_s3 + $0x28] sm:$0xf0] }
   0xd   :  { %196 = vmatpush.bf16.msra.mxu2 %v1626_v21  ;;  %v1598_v37 = vor.u32 %v2161_v34, %v1597_v33  ;;  %v1602_v38 = vor.u32 %v2160_v35, %v1599_v36  ;;  %v1589_v39 = vld [vmem:[%s3478_s3 + $0x10] sm:$0xf]  ;;  %v2159_v40 = vld [vmem:[%s3478_s3 + $0x14] sm:$0xf0]  ;;  %v2158_v41 = vld [vmem:[%s3478_s3 + $0x14] sm:$0xf] }
   0xe   :  { %v1590_v42 = vor.u32 %v2159_v40, %v1589_v39  ;;  %v1591_v43 = vld [vmem:[%s3478_s3 + $0x18] sm:$0xf0]  ;;  %v1581_v45 = vld [vmem:[%s3478_s3] sm:$0xf]  ;;  %v2157_v46 = vld [vmem:[%s3478_s3 + $0x4] sm:$0xf0] }
   0xf   :  { %v1594_v44 = vor.u32 %v2158_v41, %v1591_v43  ;;  %v2156_v47 = vld [vmem:[%s3478_s3 + $0x4] sm:$0xf]  ;;  %v1582_v48 = vor.u32 %v2157_v46, %v1581_v45  ;;  %v1583_v49 = vld [vmem:[%s3478_s3 + $0x8] sm:$0xf0]  ;;  %v1757_v51 = vld [vmem:[%s3480_s5 + $0xe0] sm:$0xf] }
  0x10   :  { %184 = vmatpush.bf16.msra.mxu1 %v1614_v25  ;;  %v1586_v50 = vor.u32 %v2156_v47, %v1583_v49  ;;  %v2202_v52 = vld [vmem:[%s3480_s5 + $0xec] sm:$0xf0]  ;;  %v2200_v53 = vld [vmem:[%s3480_s5 + $0xe4] sm:$0xf]  ;;  %v1759_v55 = vld [vmem:[%s3480_s5 + $0xf0] sm:$0xf0] }
  0x11   :  { %197 = vmatpush.bf16.msra.mxu2 %v1618_v26  ;;  %v1758_v54 = vor.u32 %v2202_v52, %v1757_v51  ;;  %v1741_v56 = vld [vmem:[%s3480_s5 + $0xc0] sm:$0xf]  ;;  %v2198_v57 = vld [vmem:[%s3480_s5 + $0xcc] sm:$0xf0]  ;;  %v1762_v58 = vor.u32 %v2200_v53, %v1759_v55  ;;  %v2196_v59 = vld [vmem:[%s3480_s5 + $0xc4] sm:$0xf] }
  0x12   :  { %v1743_v60 = vld [vmem:[%s3480_s5 + $0xd0] sm:$0xf0]  ;;  %v1885_v61 = vld [vmem:[%s3480_s5 + $0x1e0] sm:$0xf]  ;;  %v1742_v62 = vor.u32 %v2198_v57, %v1741_v56  ;;  %v2234_v63 = vld [vmem:[%s3480_s5 + $0x1ec] sm:$0xf0] }
  0x13   :  { %605 = vmatpush.bf16.msra.mxu3 %v1758_v54  ;;  %v2232_v0 = vld [vmem:[%s3480_s5 + $0x1e4] sm:$0xf]  ;;  %v1887_v1 = vld [vmem:[%s3480_s5 + $0x1f0] sm:$0xf0]  ;;  %v1746_v2 = vor.u32 %v2196_v59, %v1743_v60  ;;  %v1886_v3 = vor.u32 %v2234_v63, %v1885_v61  ;;  %v1725_v5 = vld [vmem:[%s3480_s5 + $0xa0] sm:$0xf] }
  0x14   :  { %185 = vmatpush.bf16.msra.mxu1 %v1606_v31  ;;  %v1890_v4 = vor.u32 %v2232_v0, %v1887_v1  ;;  %v2194_v6 = vld [vmem:[%s3480_s5 + $0xac] sm:$0xf0]  ;;  %v2192_v7 = vld [vmem:[%s3480_s5 + $0xa4] sm:$0xf]  ;;  %v1727_v8 = vld [vmem:[%s3480_s5 + $0xb0] sm:$0xf0] }
  0x15   :  { %198 = vmatpush.bf16.msra.mxu2 %v1610_v32  ;;  %v1869_v9 = vld [vmem:[%s3480_s5 + $0x1c0] sm:$0xf]  ;;  %v2230_v10 = vld [vmem:[%s3480_s5 + $0x1cc] sm:$0xf0]  ;;  %618 = vmatpush.bf16.msrb.mxu0 %v1886_v3  ;;  %v2228_v12 = vld [vmem:[%s3480_s5 + $0x1c4] sm:$0xf]  ;;  %v1726_v14 = vor.u32 %v2194_v6, %v1725_v5  ;;  %v1730_v18 = vor.u32 %v2192_v7, %v1727_v8 }
  0x16   :  { %v1870_v11 = vor.u32 %v2230_v10, %v1869_v9  ;;  %v1871_v13 = vld [vmem:[%s3480_s5 + $0x1d0] sm:$0xf0]  ;;  %v1709_v16 = vld [vmem:[%s3480_s5 + $0x80] sm:$0xf]  ;;  %v2190_v17 = vld [vmem:[%s3480_s5 + $0x8c] sm:$0xf0] }
  0x17   :  { %606 = vmatpush.bf16.msra.mxu3 %v1742_v62  ;;  %v1874_v15 = vor.u32 %v2228_v12, %v1871_v13  ;;  %v1853_v19 = vld [vmem:[%s3480_s5 + $0x1a0] sm:$0xf]  ;;  %v2226_v20 = vld [vmem:[%s3480_s5 + $0x1ac] sm:$0xf0]  ;;  %v2224_v21 = vld [vmem:[%s3480_s5 + $0x1a4] sm:$0xf]  ;;  %v1710_v28 = vor.u32 %v2190_v17, %v1709_v16 }
  0x18   :  { %186 = vmatpush.bf16.msra.mxu1 %v1598_v37  ;;  %v2188_v22 = vld [vmem:[%s3480_s5 + $0x84] sm:$0xf]  ;;  %v1711_v23 = vld [vmem:[%s3480_s5 + $0x90] sm:$0xf0]  ;;  %v1854_v25 = vor.u32 %v2226_v20, %v1853_v19  ;;  %v1837_v27 = vld [vmem:[%s3480_s5 + $0x180] sm:$0xf] }
  0x19   :  { %199 = vmatpush.bf16.msra.mxu2 %v1602_v38  ;;  %v1855_v24 = vld [vmem:[%s3480_s5 + $0x1b0] sm:$0xf0]  ;;  %619 = vmatpush.bf16.msrb.mxu0 %v1870_v11  ;;  %v2222_v29 = vld [vmem:[%s3480_s5 + $0x18c] sm:$0xf0]  ;;  %v2220_v30 = vld [vmem:[%s3480_s5 + $0x184] sm:$0xf]  ;;  %v1714_v32 = vor.u32 %v2188_v22, %v1711_v23 }
  0x1a   :  { %v1858_v26 = vor.u32 %v2224_v21, %v1855_v24  ;;  %v1839_v31 = vld [vmem:[%s3480_s5 + $0x190] sm:$0xf0]  ;;  %v1693_v33 = vld [vmem:[%s3480_s5 + $0x60] sm:$0xf]  ;;  %v2186_v34 = vld [vmem:[%s3480_s5 + $0x6c] sm:$0xf0]  ;;  %v1838_v37 = vor.u32 %v2222_v29, %v1837_v27 }
  0x1b   :  { %607 = vmatpush.bf16.msra.mxu3 %v1726_v14  ;;  %v2184_v35 = vld [vmem:[%s3480_s5 + $0x64] sm:$0xf]  ;;  %v1695_v36 = vld [vmem:[%s3480_s5 + $0x70] sm:$0xf0]  ;;  %v1842_v38 = vor.u32 %v2220_v30, %v1839_v31  ;;  %v1821_v39 = vld [vmem:[%s3480_s5 + $0x160] sm:$0xf]  ;;  %v1694_v40 = vor.u32 %v2186_v34, %v1693_v33 }
  0x1c   :  { %187 = vmatpush.bf16.msra.mxu1 %v1590_v42  ;;  %v2218_v41 = vld [vmem:[%s3480_s5 + $0x16c] sm:$0xf0]  ;;  %v2216_v42 = vld [vmem:[%s3480_s5 + $0x164] sm:$0xf]  ;;  %v1823_v43 = vld [vmem:[%s3480_s5 + $0x170] sm:$0xf0] }
  0x1d   :  { %200 = vmatpush.bf16.msra.mxu2 %v1594_v44  ;;  %620 = vmatpush.bf16.msrb.mxu0 %v1854_v25  ;;  %v1698_v44 = vor.u32 %v2184_v35, %v1695_v36  ;;  %v1677_v45 = vld [vmem:[%s3480_s5 + $0x40] sm:$0xf]  ;;  %v2182_v46 = vld [vmem:[%s3480_s5 + $0x4c] sm:$0xf0]  ;;  %v2180_v47 = vld [vmem:[%s3480_s5 + $0x44] sm:$0xf]  ;;  %v1822_v49 = vor.u32 %v2218_v41, %v1821_v39 }
  0x1e   :  { %v1805_v51 = vld [vmem:[%s3480_s5 + $0x140] sm:$0xf]  ;;  %v1678_v52 = vor.u32 %v2182_v46, %v1677_v45  ;;  %v2214_v53 = vld [vmem:[%s3480_s5 + $0x14c] sm:$0xf0]  ;;  %v2212_v54 = vld [vmem:[%s3480_s5 + $0x144] sm:$0xf] }
  0x1f   :  { %608 = vmatpush.bf16.msra.mxu3 %v1710_v28  ;;  %v1807_v55 = vld [vmem:[%s3480_s5 + $0x150] sm:$0xf0]  ;;  %v1661_v57 = vld [vmem:[%s3480_s5 + $0x20] sm:$0xf]  ;;  %v2176_v60 = vld [vmem:[%s3480_s5 + $0x24] sm:$0xf]  ;;  %v1806_v62 = vor.u32 %v2214_v53, %v1805_v51 }
  0x20   :  { %188 = vmatpush.bf16.msra.mxu1 %v1582_v48  ;;  %v1679_v48 = vld [vmem:[%s3480_s5 + $0x50] sm:$0xf0]  ;;  %v2312_v59 = vld [vmem:[%s3477_s2] ss:$0 sm:$0xff]  ;;  %v1810_v63 = vor.u32 %v2212_v54, %v1807_v55  ;;  %v2174_v3 = vld [vmem:[%s3480_s5 + $0xc] sm:$0xf0] }
  0x21   :  { %201 = vmatpush.bf16.msra.mxu2 %v1586_v50  ;;  %621 = vmatpush.bf16.msrb.mxu0 %v1838_v37  ;;  %v1826_v50 = vor.u32 %v2216_v42, %v1823_v43  ;;  %v1682_v56 = vor.u32 %v2180_v47, %v1679_v48  ;;  %v1663_v61 = vld [vmem:[%s3480_s5 + $0x30] sm:$0xf0]  ;;  %v1789_v0 = vld [vmem:[%s3480_s5 + $0x120] sm:$0xf]  ;;  %v2208_v5 = vld [vmem:[%s3480_s5 + $0x124] sm:$0xf] }
  0x22   :  { %v1791_v6 = vld [vmem:[%s3480_s5 + $0x130] sm:$0xf0]  ;;  %v1666_v8 = vor.u32 %v2176_v60, %v1663_v61  ;;  %v2172_v9 = vld [vmem:[%s3480_s5 + $0x4] sm:$0xf]  ;;  %v1765_v11 = vld [vmem:[%s3480_s5 + $0xe8] sm:$0xf] }
  0x23   :  { %609 = vmatpush.bf16.msra.mxu3 %v1694_v40  ;;  %v1647_v10 = vld [vmem:[%s3480_s5 + $0x10] sm:$0xf0]  ;;  %v2203_v13 = vld [vmem:[%s3480_s5 + $0xf4] sm:$0xf0]  ;;  %v2201_v14 = vld [vmem:[%s3480_s5 + $0xec] sm:$0xf]  ;;  %v1794_v17 = vor.u32 %v2208_v5, %v1791_v6 }
  0x24   :  { %631 = vmatpush.bf16.msrb.mxu1 %v1762_v58  ;;  %v2178_v58 = vld [vmem:[%s3480_s5 + $0x2c] sm:$0xf0]  ;;  %v2204_v20 = vld [vmem:[%s3480_s5 + $0x104] sm:$0xf]  ;;  %v1775_v22 = vld [vmem:[%s3480_s5 + $0x110] sm:$0xf0]  ;;  %v1650_v25 = vor.u32 %v2172_v9, %v1647_v10  ;;  %v1766_v30 = vor.u32 %v2203_v13, %v1765_v11 }
  0x25   :  { %644 = vmatpush.bf16.msrb.mxu2 %v1890_v4  ;;  %622 = vmatpush.bf16.msrb.mxu0 %v1822_v49  ;;  %v1662_v1 = vor.u32 %v2178_v58, %v1661_v57  ;;  %v2210_v4 = vld [vmem:[%s3480_s5 + $0x12c] sm:$0xf0]  ;;  %v1893_v23 = vld [vmem:[%s3480_s5 + $0x1e8] sm:$0xf]  ;;  %v2233_v27 = vld [vmem:[%s3480_s5 + $0x1ec] sm:$0xf]  ;;  %v1778_v37 = vor.u32 %v2204_v20, %v1775_v22 }
  0x26   :  { %v1790_v16 = vor.u32 %v2210_v4, %v1789_v0  ;;  %v2206_v19 = vld [vmem:[%s3480_s5 + $0x10c] sm:$0xf0]  ;;  %v1895_v28 = vld [vmem:[%s3480_s5 + $0x1f8] sm:$0xf0]  ;;  %v2199_v33 = vld [vmem:[%s3480_s5 + $0xd4] sm:$0xf0] }
  0x27   :  { %610 = vmatpush.bf16.msra.mxu3 %v1678_v52  ;;  %v2197_v34 = vld [vmem:[%s3480_s5 + $0xcc] sm:$0xf]  ;;  %v1751_v35 = vld [vmem:[%s3480_s5 + $0xd8] sm:$0xf0]  ;;  %v1898_v39 = vor.u32 %v2233_v27, %v1895_v28  ;;  %v1733_v43 = vld [vmem:[%s3480_s5 + $0xa8] sm:$0xf] }
  0x28   :  { %632 = vmatpush.bf16.msrb.mxu1 %v1746_v2  ;;  %v1645_v2 = vld [vmem:[%s3480_s5] sm:$0xf]  ;;  %v1754_v42 = vor.u32 %v2197_v34, %v1751_v35  ;;  %v2193_v45 = vld [vmem:[%s3480_s5 + $0xac] sm:$0xf]  ;;  %v1735_v47 = vld [vmem:[%s3480_s5 + $0xb8] sm:$0xf0] }
  0x29   :  { %645 = vmatpush.bf16.msrb.mxu2 %v1874_v15  ;;  %v1767_v15 = vld [vmem:[%s3480_s5 + $0xf8] sm:$0xf0]  ;;  %623 = vmatpush.bf16.msrb.mxu0 %v1806_v62  ;;  %v1646_v24 = vor.u32 %v2174_v3, %v1645_v2  ;;  %v1738_v48 = vor.u32 %v2193_v45, %v1735_v47  ;;  %v1877_v49 = vld [vmem:[%s3480_s5 + $0x1c8] sm:$0xf]  ;;  %v2229_v51 = vld [vmem:[%s3480_s5 + $0x1cc] sm:$0xf] }
  0x2a   :  { %v1770_v31 = vor.u32 %v2201_v14, %v1767_v15  ;;  %v1879_v53 = vld [vmem:[%s3480_s5 + $0x1d8] sm:$0xf0]  ;;  %v1717_v55 = vld [vmem:[%s3480_s5 + $0x88] sm:$0xf]  ;;  %v2189_v57 = vld [vmem:[%s3480_s5 + $0x8c] sm:$0xf] }
  0x2b   :  { %611 = vmatpush.bf16.msra.mxu3 %v1662_v1  ;;  %v1882_v54 = vor.u32 %v2229_v51, %v1879_v53  ;;  %v1861_v61 = vld [vmem:[%s3480_s5 + $0x1a8] sm:$0xf]  ;;  %v2227_v62 = vld [vmem:[%s3480_s5 + $0x1b4] sm:$0xf0]  ;;  %v1863_v1 = vld [vmem:[%s3480_s5 + $0x1b8] sm:$0xf0] }
  0x2c   :  { %633 = vmatpush.bf16.msrb.mxu1 %v1730_v18  ;;  %v1773_v18 = vld [vmem:[%s3480_s5 + $0x100] sm:$0xf]  ;;  %v1862_v0 = vor.u32 %v2227_v62, %v1861_v61  ;;  %v1701_v3 = vld [vmem:[%s3480_s5 + $0x68] sm:$0xf]  ;;  %v2187_v4 = vld [vmem:[%s3480_s5 + $0x74] sm:$0xf0] }
  0x2d   :  { %646 = vmatpush.bf16.msrb.mxu2 %v1858_v26  ;;  %v2235_v26 = vld [vmem:[%s3480_s5 + $0x1f4] sm:$0xf0]  ;;  %624 = vmatpush.bf16.msrb.mxu0 %v1790_v16  ;;  %v1774_v36 = vor.u32 %v2206_v19, %v1773_v18  ;;  %v1702_v5 = vor.u32 %v2187_v4, %v1701_v3  ;;  %v2185_v6 = vld [vmem:[%s3480_s5 + $0x6c] sm:$0xf]  ;;  %v1845_v9 = vld [vmem:[%s3480_s5 + $0x188] sm:$0xf] }
  0x2e   :  { %v2223_v10 = vld [vmem:[%s3480_s5 + $0x194] sm:$0xf0]  ;;  %v2221_v11 = vld [vmem:[%s3480_s5 + $0x18c] sm:$0xf]  ;;  %v1847_v13 = vld [vmem:[%s3480_s5 + $0x198] sm:$0xf0] }
  0x2f   :  { %612 = vmatpush.bf16.msra.mxu3 %v1646_v24  ;;  %v1850_v14 = vor.u32 %v2221_v11, %v1847_v13  ;;  %v1685_v15 = vld [vmem:[%s3480_s5 + $0x48] sm:$0xf]  ;;  %v2183_v16 = vld [vmem:[%s3480_s5 + $0x54] sm:$0xf0]  ;;  %v1687_v19 = vld [vmem:[%s3480_s5 + $0x58] sm:$0xf0] }
  0x30   :  { %634 = vmatpush.bf16.msrb.mxu1 %v1714_v32  ;;  %v1749_v32 = vld [vmem:[%s3480_s5 + $0xc8] sm:$0xf]  ;;  %v1686_v18 = vor.u32 %v2183_v16, %v1685_v15  ;;  %v2219_v22 = vld [vmem:[%s3480_s5 + $0x174] sm:$0xf0]  ;;  %v2209_v47 = vld [vmem:[%s3480_s5 + $0x12c] sm:$0xf] }
  0x31   :  { %647 = vmatpush.bf16.msrb.mxu2 %v1842_v38  ;;  %v1894_v38 = vor.u32 %v2235_v26, %v1893_v23  ;;  %v1750_v41 = vor.u32 %v2199_v33, %v1749_v32  ;;  %625 = vmatpush.bf16.msrb.mxu0 %v1774_v36  ;;  %v2217_v23 = vld [vmem:[%s3480_s5 + $0x16c] sm:$0xf]  ;;  %v1669_v27 = vld [vmem:[%s3480_s5 + $0x28] sm:$0xf]  ;;  %v2179_v28 = vld [vmem:[%s3480_s5 + $0x34] sm:$0xf0] }
  0x32   :  { %v1813_v32 = vld [vmem:[%s3480_s5 + $0x148] sm:$0xf]  ;;  %v2215_v33 = vld [vmem:[%s3480_s5 + $0x154] sm:$0xf0]  ;;  %v2213_v36 = vld [vmem:[%s3480_s5 + $0x14c] sm:$0xf] }
  0x33   :  { %657 = vmatpush.bf16.msrb.mxu3 %v1766_v30  ;;  %v1670_v30 = vor.u32 %v2179_v28, %v1669_v27  ;;  %v1814_v35 = vor.u32 %v2215_v33, %v1813_v32  ;;  %v1797_v45 = vld [vmem:[%s3480_s5 + $0x128] sm:$0xf]  ;;  %v2205_v53 = vld [vmem:[%s3480_s5 + $0x10c] sm:$0xf]  ;;  %v2258_v62 = vld [vmem:[%s3482_s7 + $0xb0] sm:$0xf0] }
  0x34   :  { %635 = vmatpush.bf16.msrb.mxu1 %v1698_v44  ;;  %v2195_v44 = vld [vmem:[%s3480_s5 + $0xb4] sm:$0xf0]  ;;  %v1781_v51 = vld [vmem:[%s3480_s5 + $0x108] sm:$0xf]  ;;  %v2282_v13 = vld [vmem:[%s3482_s7 + $0x170] sm:$0xf0] }
  0x35   :  { %648 = vmatpush.bf16.msrb.mxu2 %v1826_v50  ;;  %670 = vmatpush.bf16.msra.mxu0 %v1894_v38  ;;  %v1734_v46 = vor.u32 %v2195_v44, %v1733_v43  ;;  %v2231_v50 = vld [vmem:[%s3480_s5 + $0x1d4] sm:$0xf0]  ;;  %v1653_v38 = vld [vmem:[%s3480_s5 + $0x8] sm:$0xf]  ;;  %v2279_v28 = vld [vmem:[%s3482_s7 + $0x158] sm:$0xf0] }
  0x36   :  { %v1878_v52 = vor.u32 %v2231_v50, %v1877_v49  ;;  %v1799_v49 = vld [vmem:[%s3480_s5 + $0x138] sm:$0xf0]  ;;  %v2081_v11 = vld [vmem:[%s3482_s7 + $0x168] sm:$0xf]  ;;  %v2083_v15 = vld [vmem:[%s3482_s7 + $0x174] sm:$0xf0] }
  0x37   :  { %658 = vmatpush.bf16.msrb.mxu3 %v1750_v41  ;;  %v2173_v41 = vld [vmem:[%s3480_s5 + $0xc] sm:$0xf]  ;;  %v1802_v50 = vor.u32 %v2209_v47, %v1799_v49  ;;  %v1949_v33 = vld [vmem:[%s3482_s7 + $0x60] sm:$0xf]  ;;  %v2246_v47 = vld [vmem:[%s3482_s7 + $0x50] sm:$0xf0] }
  0x38   :  { %636 = vmatpush.bf16.msrb.mxu1 %v1682_v56  ;;  %v2191_v56 = vld [vmem:[%s3480_s5 + $0x94] sm:$0xf0]  ;;  %s2392_s2 = smov 52   ;;  %s2393_s25 = smov 26   ;;  %vm1291_vm1 = vcmask 211968   ;;  %vm1308_vm2 = vcmask 7168  }
  0x39   :  { %649 = vmatpush.bf16.msrb.mxu2 %v1810_v63  ;;  %671 = vmatpush.bf16.msra.mxu0 %v1878_v52  ;;  %v1718_v58 = vor.u32 %v2191_v56, %v1717_v55  ;;  %v2225_v63 = vld [vmem:[%s3480_s5 + $0x1ac] sm:$0xf]  ;;  %v2207_v52 = vld [vmem:[%s3480_s5 + $0x114] sm:$0xf0]  ;;  %v1783_v55 = vld [vmem:[%s3480_s5 + $0x118] sm:$0xf0] }
  0x3a   :  { %v1866_v2 = vor.u32 %v2225_v63, %v1863_v1  ;;  %v1786_v56 = vor.u32 %v2205_v53, %v1783_v55  ;;  %v2257_v63 = vld [vmem:[%s3482_s7 + $0xac] sm:$0xf]  ;;  %v1939_v49 = vld [vmem:[%s3482_s7 + $0x54] sm:$0xf0]  ;;  %v2047_v55 = vld [vmem:[%s3482_s7 + $0x12c] sm:$0xf0] }
  0x3b   :  { %659 = vmatpush.bf16.msrb.mxu3 %v1734_v46  ;;  %v2211_v46 = vld [vmem:[%s3480_s5 + $0x134] sm:$0xf0]  ;;  %v2273_v53 = vld [vmem:[%s3482_s7 + $0x128] sm:$0xf0]  ;;  %s2394_s27 = smov 1   ;;  %s2395_s28 = smov 103  }
  0x3c   :  { %637 = vmatpush.bf16.msrb.mxu1 %v1666_v8  ;;  %vm1316_vm3 = vcmask 416768   ;;  %s2397_s29 = smov 102   ;;  %s2399_s15 = smov 76  }
  0x3d   :  { %650 = vmatpush.bf16.msrb.mxu2 %v1794_v17  ;;  %672 = vmatpush.bf16.msra.mxu0 %v1862_v0  ;;  %v2181_v17 = vld [vmem:[%s3480_s5 + $0x4c] sm:$0xf]  ;;  %v1987_v0 = vld [vmem:[%s3482_s7 + $0xb4] sm:$0xf0]  ;;  %s2401_s16 = smov [#allocation4]   ;;  %s1560_s1 = sshll.u32 %s3488_s13, 4  ;;  %s1561_s1 = int_to_ptr.hbm [resolvable:$true] %s1560_s1 }
  0x3e   :  { %v1690_v20 = vor.u32 %v2181_v17, %v1687_v19  ;;  %v1990_v4 = vor.u32 %v2257_v63, %v1987_v0  ;;  %v1961_v19 = vld [vmem:[%s3482_s7 + $0x78] sm:$0xf]  ;;  %v2033_v0 = vld [vmem:[%s3482_s7 + $0x108] sm:$0xf]  ;;  %s1558_s17 = sshll.u32 %s2401_s16, 4  ;;  %s2402_s0 = smov [#allocation2]   ;;  %s1559_s17 = int_to_ptr.vmem [resolvable:$true] %s1558_s17 }
  0x3f   :  { %660 = vmatpush.bf16.msrb.mxu3 %v1718_v58  ;;  %s1547_s19 = sshll.u32 %s2402_s0, 4  ;;  %s1549_s21 = sshll.u32 %s3487_s12, 4  ;;  %s1548_s19 = int_to_ptr.vmem [resolvable:$true] %s1547_s19  ;;  %s1550_s21 = int_to_ptr.hbm [resolvable:$true] %s1549_s21 }
  0x40   :  { %638 = vmatpush.bf16.msrb.mxu1 %v1650_v25  ;;  %v1831_v25 = vld [vmem:[%s3480_s5 + $0x178] sm:$0xf0] }
  0x41   :  { %651 = vmatpush.bf16.msrb.mxu2 %v1778_v37  ;;  %v1834_v26 = vor.u32 %v2217_v23, %v1831_v25  ;;  %v1815_v37 = vld [vmem:[%s3480_s5 + $0x158] sm:$0xf0]  ;;  %v1963_v23 = vld [vmem:[%s3482_s7 + $0x84] sm:$0xf0] }
  0x43   :  { %661 = vmatpush.bf16.msrb.mxu3 %v1702_v5  ;;  %v1973_v5 = vld [vmem:[%s3482_s7 + $0x90] sm:$0xf] }
  0x47   :  { %662 = vmatpush.bf16.msrb.mxu3 %v1686_v18 }
  0x4b   :  { %663 = vmatpush.bf16.msrb.mxu3 %v1670_v30  ;;  %v2071_v30 = vld [vmem:[%s3482_s7 + $0x15c] sm:$0xf0] }
  0x82   :  { %v73_v7 = vpop.f32.mrf.mxu0 }
  0x83   :  { %v74_v12 = vadd.f32 %v2312_v59, %v73_v7  ;;  %v1719_v59 = vld [vmem:[%s3480_s5 + $0x98] sm:$0xf0] }
  0x84   :  { %v1722_v60 = vor.u32 %v2189_v57, %v1719_v59  ;;  %v1703_v7 = vld [vmem:[%s3480_s5 + $0x78] sm:$0xf0]  ;;  %v95_v57 = vld [vmem:[%s3479_s4] sm:$0x3] }
  0x85   :  { %v77_v21 = vmax.f32 %v74_v12, 0.0  ;;  %v1706_v8 = vor.u32 %v2185_v6, %v1703_v7  ;;  %v1846_v12 = vor.u32 %v2223_v10, %v1845_v9  ;;  %v97_v58 = vperm.slane %v95_v57, 0  ;;  %v2255_v7 = vld [vmem:[%s3482_s7 + $0x98] sm:$0xf0]  ;;  %v1975_v9 = vld [vmem:[%s3482_s7 + $0x9c] sm:$0xf0] }
  0x86   :  { %v1974_v17 = vor.u32 %v2255_v7, %v1973_v5  ;;  %v2240_v7 = vld [vmem:[%s3482_s7 + $0x20] sm:$0xf0] }
  0x87   :  { %v78_v29 = vpack.c.bf16 %v77_v21, %v77_v21  ;;  %673 = vmatpush.bf16.msra.mxu0 %v1846_v12  ;;  %v1829_v21 = vld [vmem:[%s3480_s5 + $0x168] sm:$0xf] }
  0x88   :  { %v1830_v24 = vor.u32 %v2219_v22, %v1829_v21  ;;  %v2251_v22 = vld [vmem:[%s3482_s7 + $0x7c] sm:$0xf] }
  0x89   :  { %189 = vmatmul.bf16.vlgmr.msra.gmra.mxu1 %v78_v29  ;;  %202 = vmatmul.bf16.vlgmr.msra.gmra.mxu2 %v78_v29  ;;  %v2177_v29 = vld [vmem:[%s3480_s5 + $0x2c] sm:$0xf]  ;;  %v1966_v32 = vor.u32 %v2251_v22, %v1963_v23 }
  0x8a   :  { %v75_v40 = vpop.f32.mrf.mxu0  ;;  %683 = vmatpush.bf16.msra.mxu1 %v1770_v31  ;;  %696 = vmatpush.bf16.msra.mxu2 %v1898_v39  ;;  %v1671_v31 = vld [vmem:[%s3480_s5 + $0x38] sm:$0xf0]  ;;  %v1818_v39 = vor.u32 %v2213_v36, %v1815_v37  ;;  %v1951_v36 = vld [vmem:[%s3482_s7 + $0x6c] sm:$0xf0] }
  0x8b   :  { %674 = vmatpush.bf16.msra.mxu0 %v1830_v24  ;;  %v1674_v34 = vor.u32 %v2177_v29, %v1671_v31  ;;  %v2175_v40 = vld [vmem:[%s3480_s5 + $0x14] sm:$0xf0]  ;;  %v2082_v24 = vor.u32 %v2282_v13, %v2081_v11  ;;  %v2278_v29 = vld [vmem:[%s3482_s7 + $0x154] sm:$0xf]  ;;  %v2267_v13 = vld [vmem:[%s3482_s7 + $0xf8] sm:$0xf0] }
  0x8c   :  { %v1654_v43 = vor.u32 %v2175_v40, %v1653_v38  ;;  %v2057_v40 = vld [vmem:[%s3482_s7 + $0x138] sm:$0xf] }
  0x8e   :  { %684 = vmatpush.bf16.msra.mxu1 %v1754_v42  ;;  %697 = vmatpush.bf16.msra.mxu2 %v1882_v54  ;;  %v1655_v42 = vld [vmem:[%s3480_s5 + $0x18] sm:$0xf0]  ;;  %v1782_v54 = vor.u32 %v2207_v52, %v1781_v51  ;;  %v2045_v52 = vld [vmem:[%s3482_s7 + $0x120] sm:$0xf]  ;;  %s2400_s5 = smov 51  }
  0x8f   :  { %v1658_v44 = vor.u32 %v2173_v41, %v1655_v42  ;;  %675 = vmatpush.bf16.msra.mxu0 %v1814_v35  ;;  %664 = vmatpush.bf16.msrb.mxu3 %v1654_v43  ;;  %v2248_v35 = vld [vmem:[%s3482_s7 + $0x64] sm:$0xf]  ;;  %v2275_v42 = vld [vmem:[%s3482_s7 + $0x13c] sm:$0xf]  ;;  %v2059_v43 = vld [vmem:[%s3482_s7 + $0x144] sm:$0xf0] }
  0x90   :  { %v2276_v41 = vld [vmem:[%s3482_s7 + $0x140] sm:$0xf0]  ;;  %v2062_v51 = vor.u32 %v2275_v42, %v2059_v43 }
  0x91   :  { %v2256_v42 = vld [vmem:[%s3482_s7 + $0xa0] sm:$0xf0] }
  0x92   :  { %685 = vmatpush.bf16.msra.mxu1 %v1738_v48  ;;  %698 = vmatpush.bf16.msra.mxu2 %v1866_v2  ;;  %v1798_v48 = vor.u32 %v2211_v46, %v1797_v45  ;;  %v98_v2 = vperm.slane %v95_v57, 1  ;;  %v1954_v45 = vor.u32 %v2248_v35, %v1951_v36  ;;  %v1937_v46 = vld [vmem:[%s3482_s7 + $0x48] sm:$0xf]  ;;  %v2291_v35 = vld [vmem:[%s3484_s9 + $0x38] sm:$0xff]  ;;  %v1997_v36 = vld [vmem:[%s3482_s7 + $0xc0] sm:$0xf] }
  0x94   :  { %676 = vmatpush.bf16.msra.mxu0 %v1798_v48  ;;  %v2245_v48 = vld [vmem:[%s3482_s7 + $0x4c] sm:$0xf] }
  0x95   :  { %v1942_v57 = vor.u32 %v2245_v48, %v1939_v49  ;;  %v2299_v49 = vld [vmem:[%s3484_s9 + $0x78] sm:$0xff] }
  0x96   :  { %686 = vmatpush.bf16.msra.mxu1 %v1722_v60  ;;  %699 = vmatpush.bf16.msra.mxu2 %v1850_v14  ;;  %v1985_v60 = vld [vmem:[%s3482_s7 + $0xa8] sm:$0xf]  ;;  %v2281_v14 = vld [vmem:[%s3482_s7 + $0x16c] sm:$0xf] }
  0x97   :  { %v1986_v3 = vor.u32 %v2258_v62, %v1985_v60  ;;  %v2086_v25 = vor.u32 %v2281_v14, %v2083_v15  ;;  %v2242_v60 = vld [vmem:[%s3482_s7 + $0x34] sm:$0xf]  ;;  %v2046_v62 = vor.u32 %v2273_v53, %v2045_v52  ;;  %v2023_v15 = vld [vmem:[%s3482_s7 + $0xfc] sm:$0xf0]  ;;  %v2077_v52 = vld [vmem:[%s3482_s7 + $0x158] sm:$0xf] }
  0x98   :  { %677 = vmatpush.bf16.msra.mxu0 %v1782_v54  ;;  %v2272_v54 = vld [vmem:[%s3482_s7 + $0x124] sm:$0xf]  ;;  %v2266_v14 = vld [vmem:[%s3482_s7 + $0xf4] sm:$0xf] }
  0x99   :  { %v2050_v63 = vor.u32 %v2272_v54, %v2047_v55  ;;  %v2026_v23 = vor.u32 %v2266_v14, %v2023_v15  ;;  %v2280_v54 = vld [vmem:[%s3482_s7 + $0x160] sm:$0xf0]  ;;  %v2289_v55 = vld [vmem:[%s3484_s9 + $0x28] sm:$0xff]  ;;  %v2271_v14 = vld [vmem:[%s3482_s7 + $0x118] sm:$0xf0] }
  0x9a   :  { %687 = vmatpush.bf16.msra.mxu1 %v1706_v8  ;;  %700 = vmatpush.bf16.msra.mxu2 %v1834_v26  ;;  %v2254_v8 = vld [vmem:[%s3482_s7 + $0x94] sm:$0xf]  ;;  %v2069_v26 = vld [vmem:[%s3482_s7 + $0x150] sm:$0xf] }
  0x9b   :  { %v1978_v18 = vor.u32 %v2254_v8, %v1975_v9  ;;  %v2070_v38 = vor.u32 %v2279_v28, %v2069_v26  ;;  %v2239_v8 = vld [vmem:[%s3482_s7 + $0x1c] sm:$0xf]  ;;  %v1915_v9 = vld [vmem:[%s3482_s7 + $0x24] sm:$0xf0]  ;;  %v2286_v15 = vld [vmem:[%s3484_s9 + $0x10] sm:$0xff] }
  0x9c   :  { %v2263_v26 = vld [vmem:[%s3482_s7 + $0xdc] sm:$0xf] }
  0x9e   :  { %688 = vmatpush.bf16.msra.mxu1 %v1690_v20  ;;  %701 = vmatpush.bf16.msra.mxu2 %v1818_v39  ;;  %v2252_v20 = vld [vmem:[%s3482_s7 + $0x80] sm:$0xf0]  ;;  %v2074_v39 = vor.u32 %v2278_v29, %v2071_v30 }
  0x9f   :  { %v1962_v31 = vor.u32 %v2252_v20, %v1961_v19  ;;  %v2237_v19 = vld [vmem:[%s3482_s7 + $0x8] sm:$0xf0]  ;;  %v2236_v20 = vld [vmem:[%s3482_s7 + $0x4] sm:$0xf] }
  0xa2   :  { %689 = vmatpush.bf16.msra.mxu1 %v1674_v34  ;;  %702 = vmatpush.bf16.msra.mxu2 %v1802_v50  ;;  %v2249_v34 = vld [vmem:[%s3482_s7 + $0x68] sm:$0xf0]  ;;  %v2058_v50 = vor.u32 %v2276_v41, %v2057_v40  ;;  %v1999_v40 = vld [vmem:[%s3482_s7 + $0xcc] sm:$0xf0]  ;;  %v1981_v41 = vld [vmem:[%s3482_s7 + $0x98] sm:$0xf] }
  0xa6   :  { %690 = vmatpush.bf16.msra.mxu1 %v1658_v44  ;;  %703 = vmatpush.bf16.msra.mxu2 %v1786_v56  ;;  %v1950_v44 = vor.u32 %v2249_v34, %v1949_v33  ;;  %v1938_v56 = vor.u32 %v2246_v47, %v1937_v46  ;;  %v2259_v33 = vld [vmem:[%s3482_s7 + $0xb8] sm:$0xf0]  ;;  %v2290_v47 = vld [vmem:[%s3484_s9 + $0x30] sm:$0xff] }
  0xa7   :  { %v2283_v46 = vld [vmem:[%s3482_s7 + $0x178] sm:$0xf0] }
 0x106   :  { %v190_v59 = vpop.f32.mrf.mxu1 }
 0x107   :  { %v191_v61 = vadd.f32 %v190_v59, %v97_v58  ;;  %v1925_v58 = vld [vmem:[%s3482_s7 + $0x30] sm:$0xf]  ;;  %v2243_v59 = vld [vmem:[%s3482_s7 + $0x38] sm:$0xf0] }
 0x109   :  { %v207_v1 = vmax.f32 %v191_v61, 0.0  ;;  %v1927_v61 = vld [vmem:[%s3482_s7 + $0x3c] sm:$0xf0] }
 0x10a   :  { %v1930_v5 = vor.u32 %v2242_v60, %v1927_v61  ;;  %v2065_v60 = vld [vmem:[%s3482_s7 + $0x140] sm:$0xf] }
 0x10b   :  { %v2981_v6 = vpack.c.bf16 %v207_v1, %v207_v1  ;;  %v2270_v1 = vld [vmem:[%s3482_s7 + $0x110] sm:$0xf0] }
 0x10c   :  { %v203_v10 = vpop.f32.mrf.mxu2 }
 0x10d   :  { %v204_v12 = vadd.f32 %v203_v10, %v98_v2  ;;  %613 = vmatmul.bf16.vlgmr.msra.gmra.mxu3 %v2981_v6  ;;  %639 = vmatmul.bf16.vlgmr.msrb.gmra.mxu1 %v2981_v6  ;;  %v2269_v2 = vld [vmem:[%s3482_s7 + $0x10c] sm:$0xf]  ;;  %v2034_v10 = vor.u32 %v2270_v1, %v2033_v0 }
 0x10e   :  { %v192_v16 = vpop.f32.mrf.mxu1  ;;  %1043 = vmatpush.bf16.msra.mxu3 %v1986_v3  ;;  %1069 = vmatpush.bf16.msrb.mxu1 %v1990_v4  ;;  %v2035_v3 = vld [vmem:[%s3482_s7 + $0x114] sm:$0xf0]  ;;  %v1926_v4 = vor.u32 %v2243_v59, %v1925_v58  ;;  %v1957_v58 = vld [vmem:[%s3482_s7 + $0x68] sm:$0xf]  ;;  %v2250_v59 = vld [vmem:[%s3482_s7 + $0x70] sm:$0xf0] }
 0x10f   :  { %v208_v21 = vmax.f32 %v204_v12, 0.0  ;;  %v2038_v11 = vor.u32 %v2269_v2, %v2035_v3  ;;  %v2021_v12 = vld [vmem:[%s3482_s7 + $0xf0] sm:$0xf]  ;;  %v1958_v61 = vor.u32 %v2250_v59, %v1957_v58  ;;  %v2297_v0 = vld [vmem:[%s3484_s9 + $0x68] sm:$0xff]  ;;  %v2247_v3 = vld [vmem:[%s3482_s7 + $0x58] sm:$0xf0] }
 0x110   :  { %v2022_v22 = vor.u32 %v2267_v13, %v2021_v12  ;;  %v1945_v2 = vld [vmem:[%s3482_s7 + $0x50] sm:$0xf] }
 0x111   :  { %v3021_v27 = vpack.c.bf16 %v208_v21, %v208_v21  ;;  %v1903_v21 = vld [vmem:[%s3482_s7 + $0xc] sm:$0xf0] }
 0x112   :  { %1044 = vmatpush.bf16.msra.mxu3 %v1974_v17  ;;  %1070 = vmatpush.bf16.msrb.mxu1 %v1978_v18  ;;  %v1918_v17 = vor.u32 %v2239_v8, %v1915_v9  ;;  %v1901_v18 = vld [vmem:[%s3482_s7] sm:$0xf]  ;;  %v1906_v29 = vor.u32 %v2236_v20, %v1903_v21  ;;  %v2041_v12 = vld [vmem:[%s3482_s7 + $0x110] sm:$0xf]  ;;  %v2029_v20 = vld [vmem:[%s3482_s7 + $0xf8] sm:$0xf] }
 0x113   :  { %626 = vmatmul.bf16.vlgmr.msrb.gmra.mxu0 %v3021_v27  ;;  %652 = vmatmul.bf16.vlgmr.msrb.gmra.mxu2 %v3021_v27  ;;  %v1902_v28 = vor.u32 %v2237_v19, %v1901_v18  ;;  %v2296_v8 = vld [vmem:[%s3484_s9 + $0x60] sm:$0xff]  ;;  %v2241_v19 = vld [vmem:[%s3482_s7 + $0x28] sm:$0xf0] }
 0x114   :  { %v205_v37 = vpop.f32.mrf.mxu2  ;;  %1056 = vmatpush.bf16.msrb.mxu0 %v2082_v24  ;;  %1082 = vmatpush.bf16.msrb.mxu2 %v2086_v25  ;;  %v2009_v24 = vld [vmem:[%s3482_s7 + $0xd8] sm:$0xf]  ;;  %v2264_v25 = vld [vmem:[%s3482_s7 + $0xe0] sm:$0xf0]  ;;  %v1921_v18 = vld [vmem:[%s3482_s7 + $0x20] sm:$0xf] }
 0x115   :  { %v2010_v30 = vor.u32 %v2264_v25, %v2009_v24  ;;  %v2261_v37 = vld [vmem:[%s3482_s7 + $0xc8] sm:$0xf0]  ;;  %v1922_v21 = vor.u32 %v2241_v19, %v1921_v18  ;;  %v2294_v24 = vld [vmem:[%s3484_s9 + $0x50] sm:$0xff] }
 0x116   :  { %1045 = vmatpush.bf16.msra.mxu3 %v1962_v31  ;;  %1071 = vmatpush.bf16.msrb.mxu1 %v1966_v32  ;;  %v1993_v32 = vld [vmem:[%s3482_s7 + $0xb0] sm:$0xf] }
 0x117   :  { %v1994_v34 = vor.u32 %v2259_v33, %v1993_v32  ;;  %v2293_v32 = vld [vmem:[%s3484_s9 + $0x48] sm:$0xff] }
 0x118   :  { %1057 = vmatpush.bf16.msrb.mxu0 %v2070_v38  ;;  %1083 = vmatpush.bf16.msrb.mxu2 %v2074_v39  ;;  %v2260_v38 = vld [vmem:[%s3482_s7 + $0xc4] sm:$0xf]  ;;  %v1998_v39 = vor.u32 %v2261_v37, %v1997_v36 }
 0x119   :  { %v2002_v43 = vor.u32 %v2260_v38, %v1999_v40  ;;  %v2292_v37 = vld [vmem:[%s3484_s9 + $0x40] sm:$0xff] }
 0x11a   :  { %1046 = vmatpush.bf16.msra.mxu3 %v1950_v44  ;;  %1072 = vmatpush.bf16.msrb.mxu1 %v1954_v45  ;;  %v1982_v44 = vor.u32 %v2256_v42, %v1981_v41  ;;  %v2089_v45 = vld [vmem:[%s3482_s7 + $0x170] sm:$0xf] }
 0x11b   :  { %v2090_v48 = vor.u32 %v2283_v46, %v2089_v45 }
 0x11c   :  { %1058 = vmatpush.bf16.msrb.mxu0 %v2058_v50  ;;  %1084 = vmatpush.bf16.msrb.mxu2 %v2062_v51  ;;  %v1969_v50 = vld [vmem:[%s3482_s7 + $0x80] sm:$0xf]  ;;  %v2253_v51 = vld [vmem:[%s3482_s7 + $0x88] sm:$0xf0] }
 0x11d   :  { %665 = vmatmul.bf16.vlgmr.msrb.gmra.mxu3 %v2981_v6  ;;  %691 = vmatmul.bf16.vlgmr.msra.gmra.mxu1 %v2981_v6  ;;  %v1913_v6 = vld [vmem:[%s3482_s7 + $0x18] sm:$0xf]  ;;  %v1970_v53 = vor.u32 %v2253_v51, %v1969_v50 }
 0x11e   :  { %1047 = vmatpush.bf16.msra.mxu3 %v1938_v56  ;;  %1073 = vmatpush.bf16.msrb.mxu1 %v1942_v57  ;;  %v1914_v16 = vor.u32 %v2240_v7, %v1913_v6  ;;  %v2298_v56 = vld [vmem:[%s3484_s9 + $0x70] sm:$0xff]  ;;  %v2078_v57 = vor.u32 %v2280_v54, %v2077_v52  ;;  %v2287_v7 = vld [vmem:[%s3484_s9 + $0x18] sm:$0xff] }
 0x11f   :  { %v2274_v6 = vld [vmem:[%s3482_s7 + $0x130] sm:$0xf0] }
 0x120   :  { %1059 = vmatpush.bf16.msrb.mxu0 %v2046_v62  ;;  %1085 = vmatpush.bf16.msrb.mxu2 %v2050_v63  ;;  %v2277_v62 = vld [vmem:[%s3482_s7 + $0x148] sm:$0xf0]  ;;  %v2288_v63 = vld [vmem:[%s3484_s9 + $0x20] sm:$0xff] }
 0x121   :  { %v2066_v1 = vor.u32 %v2277_v62, %v2065_v60 }
 0x122   :  { %1048 = vmatpush.bf16.msra.mxu3 %v1926_v4  ;;  %1074 = vmatpush.bf16.msrb.mxu1 %v1930_v5  ;;  %v2053_v4 = vld [vmem:[%s3482_s7 + $0x128] sm:$0xf]  ;;  %v1946_v5 = vor.u32 %v2247_v3, %v1945_v2 }
 0x123   :  { %678 = vmatmul.bf16.vlgmr.msra.gmra.mxu0 %v3021_v27  ;;  %704 = vmatmul.bf16.vlgmr.msra.gmra.mxu2 %v3021_v27  ;;  %v2011_v27 = vld [vmem:[%s3482_s7 + $0xe4] sm:$0xf0]  ;;  %v2054_v9 = vor.u32 %v2274_v6, %v2053_v4 }
 0x124   :  { %1060 = vmatpush.bf16.msrb.mxu0 %v2034_v10  ;;  %1086 = vmatpush.bf16.msrb.mxu2 %v2038_v11  ;;  %v2014_v31 = vor.u32 %v2263_v26, %v2011_v27  ;;  %v1933_v10 = vld [vmem:[%s3482_s7 + $0x38] sm:$0xf]  ;;  %v2244_v11 = vld [vmem:[%s3482_s7 + $0x40] sm:$0xf0]  ;;  %v1909_v26 = vld [vmem:[%s3482_s7 + $0x8] sm:$0xf] }
 0x125   :  { %v1934_v13 = vor.u32 %v2244_v11, %v1933_v10  ;;  %v2238_v27 = vld [vmem:[%s3482_s7 + $0x10] sm:$0xf0] }
 0x126   :  { %1049 = vmatpush.bf16.msra.mxu3 %v1914_v16  ;;  %1075 = vmatpush.bf16.msrb.mxu1 %v1918_v17  ;;  %v2295_v16 = vld [vmem:[%s3484_s9 + $0x58] sm:$0xff]  ;;  %v2042_v17 = vor.u32 %v2271_v14, %v2041_v12  ;;  %v779_v12 = vld [vmem:[%s3483_s8] sm:$0x7] }
 0x128   :  { %1061 = vmatpush.bf16.msrb.mxu0 %v2022_v22  ;;  %1087 = vmatpush.bf16.msrb.mxu2 %v2026_v23  ;;  %v2268_v22 = vld [vmem:[%s3482_s7 + $0x100] sm:$0xf0]  ;;  %v2285_v23 = vld [vmem:[%s3484_s9 + $0x8] sm:$0xff] }
 0x129   :  { %v2030_v25 = vor.u32 %v2268_v22, %v2029_v20 }
 0x12a   :  { %1050 = vmatpush.bf16.msra.mxu3 %v1902_v28  ;;  %1076 = vmatpush.bf16.msrb.mxu1 %v1906_v29  ;;  %v2017_v28 = vld [vmem:[%s3482_s7 + $0xe0] sm:$0xf]  ;;  %v1910_v29 = vor.u32 %v2238_v27, %v1909_v26  ;;  %v783_v27 = vperm.slane %v779_v12, 2 }
 0x12c   :  { %1062 = vmatpush.bf16.msrb.mxu0 %v2010_v30  ;;  %1088 = vmatpush.bf16.msrb.mxu2 %v2014_v31  ;;  %v2265_v30 = vld [vmem:[%s3482_s7 + $0xe8] sm:$0xf0]  ;;  %v2284_v31 = vld [vmem:[%s3484_s9] sm:$0xff]  ;;  %s2391_s9 = smov 77  }
 0x12d   :  { %v2018_v33 = vor.u32 %v2265_v30, %v2017_v28 }
 0x12e   :  { %1095 = vmatpush.bf16.msrb.mxu3 %v1994_v34  ;;  %1255 = vmatpush.bf16.msra.mxu1 %v2291_v35  ;;  %v2005_v34 = vld [vmem:[%s3482_s7 + $0xc8] sm:$0xf]  ;;  %v2262_v35 = vld [vmem:[%s3482_s7 + $0xd0] sm:$0xf0] }
 0x12f   :  { %v2006_v36 = vor.u32 %v2262_v35, %v2005_v34 }
 0x130   :  { %1063 = vmatpush.bf16.msrb.mxu0 %v1998_v39  ;;  %1089 = vmatpush.bf16.msrb.mxu2 %v2002_v43  ;;  %v275_v39 = vld [vmem:[%s3481_s6] sm:$0xf] }
 0x131   :  { %v277_v40 = vperm.slane %v275_v39, 0  ;;  %v278_v43 = vperm.slane %v275_v39, 1 }
 0x132   :  { %1096 = vmatpush.bf16.msrb.mxu3 %v1982_v44  ;;  %1256 = vmatpush.bf16.msra.mxu1 %v2290_v47 }
 0x134   :  { %1108 = vmatpush.bf16.msra.mxu0 %v2090_v48  ;;  %1268 = vmatpush.bf16.msra.mxu2 %v2299_v49 }
 0x136   :  { %1097 = vmatpush.bf16.msrb.mxu3 %v1970_v53  ;;  %1257 = vmatpush.bf16.msra.mxu1 %v2289_v55 }
 0x138   :  { %1109 = vmatpush.bf16.msra.mxu0 %v2078_v57  ;;  %1269 = vmatpush.bf16.msra.mxu2 %v2298_v56  ;;  %v279_v57 = vperm.slane %v275_v39, 2 }
 0x13a   :  { %1098 = vmatpush.bf16.msrb.mxu3 %v1958_v61  ;;  %1258 = vmatpush.bf16.msra.mxu1 %v2288_v63  ;;  %v280_v61 = vperm.slane %v275_v39, 3 }
 0x13c   :  { %1110 = vmatpush.bf16.msra.mxu0 %v2066_v1  ;;  %1270 = vmatpush.bf16.msra.mxu2 %v2297_v0 }
 0x13e   :  { %1099 = vmatpush.bf16.msrb.mxu3 %v1946_v5  ;;  %1259 = vmatpush.bf16.msra.mxu1 %v2287_v7 }
 0x140   :  { %1111 = vmatpush.bf16.msra.mxu0 %v2054_v9  ;;  %1271 = vmatpush.bf16.msra.mxu2 %v2296_v8 }
 0x142   :  { %1100 = vmatpush.bf16.msrb.mxu3 %v1934_v13  ;;  %1260 = vmatpush.bf16.msra.mxu1 %v2286_v15  ;;  %v781_v13 = vperm.slane %v779_v12, 0  ;;  %v782_v15 = vperm.slane %v779_v12, 1 }
 0x144   :  { %1112 = vmatpush.bf16.msra.mxu0 %v2042_v17  ;;  %1272 = vmatpush.bf16.msra.mxu2 %v2295_v16 }
 0x146   :  { %1101 = vmatpush.bf16.msrb.mxu3 %v1922_v21  ;;  %1261 = vmatpush.bf16.msra.mxu1 %v2285_v23 }
 0x148   :  { %1113 = vmatpush.bf16.msra.mxu0 %v2030_v25  ;;  %1273 = vmatpush.bf16.msra.mxu2 %v2294_v24 }
 0x14a   :  { %1102 = vmatpush.bf16.msrb.mxu3 %v1910_v29  ;;  %1262 = vmatpush.bf16.msra.mxu1 %v2284_v31  ;;  %v2313_v29 = vld [vmem:[%s3485_s10] ss:$0 sm:$0xff]  ;;  %s2396_s10 = smov 25  }
 0x14c   :  { %1114 = vmatpush.bf16.msra.mxu0 %v2018_v33  ;;  %1274 = vmatpush.bf16.msra.mxu2 %v2293_v32 }
 0x150   :  { %1115 = vmatpush.bf16.msra.mxu0 %v2006_v36  ;;  %1275 = vmatpush.bf16.msra.mxu2 %v2292_v37 }
 0x18a   :  { %v640_v38 = vpop.f32.mrf.mxu1 }
 0x18b   :  { %v641_v47 = vadd.f32 %v640_v38, %v278_v43 }
 0x190   :  { %v614_v41 = vpop.f32.mrf.mxu3  ;;  %v627_v42 = vpop.f32.mrf.mxu0 }
 0x191   :  { %v615_v44 = vadd.f32 %v614_v41, %v277_v40 }
 0x192   :  { %v642_v45 = vpop.f32.mrf.mxu1 }
 0x193   :  { %v628_v46 = vadd.f32 %v627_v42, %v615_v44 }
 0x195   :  { %v709_v48 = vmax.f32 %v628_v46, 0.0 }
 0x196   :  { %v653_v49 = vpop.f32.mrf.mxu2 }
 0x197   :  { %v713_v50 = vpack.c.bf16 %v709_v48, %v709_v48  ;;  %v654_v51 = vadd.f32 %v653_v49, %v641_v47 }
 0x198   :  { %v616_v52 = vpop.f32.mrf.mxu3  ;;  %v629_v53 = vpop.f32.mrf.mxu0 }
 0x199   :  { %v710_v54 = vmax.f32 %v654_v51, 0.0  ;;  %1051 = vmatmul.bf16.vlgmr.msra.gmra.mxu3 %v713_v50  ;;  %1077 = vmatmul.bf16.vlgmr.msrb.gmra.mxu1 %v713_v50 }
 0x19a   :  { %v692_v55 = vpop.f32.mrf.mxu1 }
 0x19b   :  { %v714_v56 = vpack.c.bf16 %v710_v54, %v710_v54  ;;  %v693_v1 = vadd.f32 %v692_v55, %v280_v61 }
 0x19d   :  { %1064 = vmatmul.bf16.vlgmr.msrb.gmra.mxu0 %v714_v56  ;;  %1090 = vmatmul.bf16.vlgmr.msrb.gmra.mxu2 %v714_v56 }
 0x19e   :  { %v655_v58 = vpop.f32.mrf.mxu2 }
 0x1a0   :  { %v666_v59 = vpop.f32.mrf.mxu3  ;;  %v679_v60 = vpop.f32.mrf.mxu0 }
 0x1a1   :  { %v667_v62 = vadd.f32 %v666_v59, %v279_v57 }
 0x1a2   :  { %v694_v63 = vpop.f32.mrf.mxu1 }
 0x1a3   :  { %v680_v0 = vadd.f32 %v679_v60, %v667_v62 }
 0x1a5   :  { %v711_v2 = vmax.f32 %v680_v0, 0.0 }
 0x1a6   :  { %v705_v3 = vpop.f32.mrf.mxu2 }
 0x1a7   :  { %v1121_v4 = vpack.c.bf16 %v711_v2, %v711_v2  ;;  %v706_v5 = vadd.f32 %v705_v3, %v693_v1 }
 0x1a8   :  { %v668_v6 = vpop.f32.mrf.mxu3  ;;  %v681_v7 = vpop.f32.mrf.mxu0 }
 0x1a9   :  { %v712_v8 = vmax.f32 %v706_v5, 0.0  ;;  %1103 = vmatmul.bf16.vlgmr.msrb.gmra.mxu3 %v713_v50  ;;  %1263 = vmatmul.bf16.vlgmr.msra.gmra.mxu1 %v1121_v4 }
 0x1ab   :  { %v1122_v9 = vpack.c.bf16 %v712_v8, %v712_v8 }
 0x1ad   :  { %1116 = vmatmul.bf16.vlgmr.msra.gmra.mxu0 %v714_v56  ;;  %1276 = vmatmul.bf16.vlgmr.msra.gmra.mxu2 %v1122_v9 }
 0x1ae   :  { %v707_v10 = vpop.f32.mrf.mxu2 }
 0x216   :  { %v1078_v11 = vpop.f32.mrf.mxu1 }
 0x217   :  { %v1079_v19 = vadd.f32 %v1078_v11, %v782_v15 }
 0x21a   :  { %v1065_v14 = vpop.f32.mrf.mxu0 }
 0x21c   :  { %v1052_v16 = vpop.f32.mrf.mxu3 }
 0x21d   :  { %v1053_v17 = vadd.f32 %v1052_v16, %v781_v13 }
 0x21e   :  { %v1080_v18 = vpop.f32.mrf.mxu1 }
 0x21f   :  { %v1066_v20 = vadd.f32 %v1065_v14, %v1053_v17 }
 0x220   :  { %v1091_v21 = vpop.f32.mrf.mxu2 }
 0x221   :  { %v1092_v22 = vadd.f32 %v1091_v21, %v1079_v19  ;;  %1282 = vrot.lane.b32.xlu0 %v1066_v20, %s2391_s9 }
 0x222   :  { %v1067_v23 = vpop.f32.mrf.mxu0 }
 0x223   :  { %1299 = vrot.lane.b32.xlu2 %v1092_v22, %s2392_s2  ;;  %1289 = vrot.lane.b32.xlu1 %v1092_v22, %s2393_s25 }
 0x224   :  { %v1054_v24 = vpop.f32.mrf.mxu3 }
 0x226   :  { %v1264_v25 = vpop.f32.mrf.mxu1 }
 0x227   :  { %v1265_v33 = vadd.f32 %v2313_v29, %v1264_v25 }
 0x228   :  { %v1093_v26 = vpop.f32.mrf.mxu2 }
 0x229   :  { %1287 = vrot.lane.b32.xlu0 %v1066_v20, %s2393_s25 }
 0x22a   :  { %v1117_v28 = vpop.f32.mrf.mxu0 }
 0x22b   :  { %1304 = vrot.lane.b32.xlu2 %v1092_v22, %s2394_s27  ;;  %1295 = vrot.lane.b32.xlu1 %v1092_v22, %s2395_s28 }
 0x22c   :  { %v1104_v30 = vpop.f32.mrf.mxu3 }
 0x22d   :  { %v1105_v31 = vadd.f32 %v1104_v30, %v783_v27 }
 0x22e   :  { %v1266_v32 = vpop.f32.mrf.mxu1 }
 0x22f   :  { %v1118_v34 = vadd.f32 %v1117_v28, %v1105_v31 }
 0x230   :  { %v1277_v35 = vpop.f32.mrf.mxu2 }
 0x231   :  { %v1278_v36 = vadd.f32 %v1277_v35, %v1265_v33  ;;  %1306 = vrot.lane.b32.xlu0 %v1118_v34, %s2394_s27 }
 0x232   :  { %v1119_v37 = vpop.f32.mrf.mxu0 }
 0x233   :  { %v1314_v57 = vadd.f32 %v1278_v36, %v1066_v20 }
 0x234   :  { %v1106_v38 = vpop.f32.mrf.mxu3 }
 0x238   :  { %v1279_v39 = vpop.f32.mrf.mxu2 }
 0x27d   :  { %v1300_v42 = vpop.permute.xlu2 %1299 }
 0x27e   :  { %v1438_v1 = vadd.f32 %v1300_v42, %v1278_v36 }
 0x285   :  { %v1305_v49 = vpop.permute.xlu2 %1304 }
 0x293   :  { %v1283_v40 = vpop.permute.xlu0 %1282 }
 0x294   :  { %v1285_v43 = vadd.f32 %v1283_v40, %v1066_v20  ;;  %v1348_v54 = vadd.f32 %v1283_v40, %v1278_v36 }
 0x295   :  { %v1290_v41 = vpop.permute.xlu1 %1289 }
 0x29b   :  { %v1288_v44 = vpop.permute.xlu0 %1287 }
 0x29c   :  { %v1292_v45 = vsel %vm1291_vm1, %v1288_v44, %v1290_v41 }
 0x29d   :  { %v1294_v46 = vadd.f32 %v1292_v45, %v1285_v43  ;;  %v1296_v47 = vpop.permute.xlu1 %1295  ;;  %v1378_v55 = vadd.f32 %v1292_v45, %v1278_v36 }
 0x29e   :  { %v1408_v0 = vadd.f32 %v1296_v47, %v1278_v36 }
 0x29f   :  { %v1298_v48 = vadd.f32 %v1296_v47, %v1294_v46 }
 0x2a1   :  { %v1302_v50 = vadd.f32 %v1300_v42, %v1298_v48 }
 0x2a3   :  { %v1307_v51 = vpop.permute.xlu0 %1306 }
 0x2a4   :  { %v1309_v52 = vsel %vm1308_vm2, %v1305_v49, %v1307_v51 }
 0x2a5   :  { %v1311_v53 = vadd.f32 %v1309_v52, %v1302_v50  ;;  %v1468_v6 = vadd.f32 %v1309_v52, %v1278_v36 }
 0x2a7   :  { %v1312_v56 = vmul.f32 0.16666667, %v1311_v53 }
 0x2a9   :  { %v3324_v58 = vsub.f32 %v1378_v55, %v1312_v56  ;;  %v3326_v59 = vsub.f32 %v1348_v54, %v1312_v56  ;;  %v3328_v60 = vsub.f32 %v1314_v57, %v1312_v56  ;;  %v1409_v2 = vsub.f32 %v1408_v0, %v1312_v56 }
 0x2aa   :  { %v3336_v3 = vsub.f32 %v1438_v1, %v1312_v56  ;;  %v3341_v7 = vsub.f32 %v1468_v6, %v1312_v56 }
 0x2ab   :  { %v1380_v61 = vsel %vm1316_vm3, %v3324_v58, -inf  ;;  %v1350_v62 = vsel %vm1316_vm3, %v3326_v59, -inf  ;;  %v1317_v63 = vsel %vm1316_vm3, %v3328_v60, -inf  ;;  %v1410_v4 = vsel %vm1316_vm3, %v1409_v2, -inf }
 0x2ac   :  { %1381 = vmax.xlane.f32.xlu0 %v1380_v61  ;;  %1351 = vmax.xlane.f32.xlu2 %v1350_v62  ;;  %v1440_v5 = vsel %vm1316_vm3, %v3336_v3, -inf  ;;  %v1470_v8 = vsel %vm1316_vm3, %v3341_v7, -inf }
 0x2ad   :  { %1318 = vmax.xlane.f32.xlu1 %v1317_v63 }
 0x2b4   :  { %1411 = vmax.xlane.f32.xlu2 %v1410_v4 }
 0x2b5   :  { %1441 = vmax.xlane.f32.xlu1 %v1440_v5 }
 0x2bc   :  { %1471 = vmax.xlane.f32.xlu2 %v1470_v8 }
 0x31f   :  { %v1382_v9 = vpop.xlane.xlu0 %1381  ;;  %v1352_v10 = vpop.xlane.xlu2 %1351 }
 0x320   :  { %v1383_v11 = vsub.f32 %v3324_v58, %v1382_v9  ;;  %v1353_v12 = vsub.f32 %v3326_v59, %v1352_v10  ;;  %v1319_v13 = vpop.xlane.xlu1 %1318 }
 0x321   :  { %v1320_v14 = vsub.f32 %v3328_v60, %v1319_v13 }
 0x322   :  { %v1384_v15 = vmul.f32 1.442695, %v1383_v11  ;;  %v1354_v16 = vmul.f32 1.442695, %v1353_v12 }
 0x323   :  { %v1321_v17 = vmul.f32 1.442695, %v1320_v14 }
 0x324   :  { %2315 = vpow2.f32 %v1384_v15 }
 0x325   :  { %2317 = vpow2.f32 %v1354_v16 }
 0x326   :  { %2319 = vpow2.f32 %v1321_v17 }
 0x327   :  { %v1412_v18 = vpop.xlane.xlu2 %1411 }
 0x328   :  { %v1413_v19 = vsub.f32 %v1409_v2, %v1412_v18  ;;  %v1442_v20 = vpop.xlane.xlu1 %1441 }
 0x329   :  { %v1443_v21 = vsub.f32 %v3336_v3, %v1442_v20 }
 0x32a   :  { %v3349_v22 = vpop.eup %2315  ;;  %v1414_v23 = vmul.f32 1.442695, %v1413_v19  ;;  %v3415_v19 = vld [vmem:[%s3486_s11] ss:$0 sm:$0xff]  ;;  %s2398_s11 = smov 127  }
 0x32b   :  { %v3351_v24 = vpop.eup %2317  ;;  %v1444_v25 = vmul.f32 1.442695, %v1443_v21  ;;  %v1386_v26 = vsel %vm1316_vm3, %v3349_v22, 0.0 }
 0x32c   :  { %v3355_v27 = vpop.eup %2319  ;;  %2321 = vpow2.f32 %v1414_v23  ;;  %1387 = vadd.xlane.f32.xlu2 %v1386_v26  ;;  %v1356_v28 = vsel %vm1316_vm3, %v3351_v24, 0.0 }
 0x32d   :  { %2323 = vpow2.f32 %v1444_v25  ;;  %1357 = vadd.xlane.f32.xlu1 %v1356_v28  ;;  %v1323_v29 = vsel %vm1316_vm3, %v3355_v27, 0.0 }
 0x32e   :  { %1324 = vadd.xlane.f32.xlu0 %v1323_v29 }
 0x32f   :  { %v1472_v30 = vpop.xlane.xlu2 %1471 }
 0x330   :  { %v1473_v31 = vsub.f32 %v3341_v7, %v1472_v30 }
 0x332   :  { %v3362_v32 = vpop.eup %2321  ;;  %v1474_v33 = vmul.f32 1.442695, %v1473_v31 }
 0x333   :  { %v3364_v34 = vpop.eup %2323  ;;  %v1416_v35 = vsel %vm1316_vm3, %v3362_v32, 0.0 }
 0x334   :  { %2325 = vpow2.f32 %v1474_v33  ;;  %v1446_v36 = vsel %vm1316_vm3, %v3364_v34, 0.0 }
 0x335   :  { %1447 = vadd.xlane.f32.xlu1 %v1446_v36 }
 0x336   :  { %1417 = vadd.xlane.f32.xlu0 %v1416_v35 }
 0x33a   :  { %v3370_v37 = vpop.eup %2325 }
 0x33b   :  { %v1476_v38 = vsel %vm1316_vm3, %v3370_v37, 0.0 }
 0x33c   :  { %1477 = vadd.xlane.f32.xlu2 %v1476_v38 }
 0x34a   :  { %1507 = vrot.lane.b32.xlu0 %v1409_v2, %s2396_s10 }
 0x354   :  { %1503 = vrot.lane.b32.xlu2 %v3324_v58, %s2397_s29 }
 0x39f   :  { %v1388_v39 = vpop.xlane.xlu2 %1387 }
 0x3a0   :  { %2327 = vrcp.f32 %v1388_v39  ;;  %v1358_v40 = vpop.xlane.xlu1 %1357  ;;  %vm1394_vm4 = vweird.f32 %v1388_v39  ;;  %v1400_v46 = vand.u32 2147483648, %v1388_v39  ;;  %v1398_v49 = vand.u32 2147483647, %v1388_v39 }
 0x3a1   :  { %v1325_v41 = vpop.xlane.xlu0 %1324  ;;  %2329 = vrcp.f32 %v1358_v40  ;;  %v1370_v52 = vand.u32 2147483648, %v1358_v40  ;;  %v1368_v56 = vand.u32 2147483647, %v1358_v40  ;;  %vm1364_vm7 = vweird.f32 %v1358_v40 }
 0x3a2   :  { %2331 = vrcp.f32 %v1325_v41  ;;  %v1337_v54 = vand.u32 2147483648, %v1325_v41  ;;  %v1335_v61 = vand.u32 2147483647, %v1325_v41  ;;  %v1401_v62 = vor.u32 1.1754944e-38, %v1400_v46 }
 0x3a3   :  { %vm1331_vm6 = vweird.f32 %v1325_v41  ;;  %v1371_v1 = vor.u32 1.1754944e-38, %v1370_v52  ;;  %vm3386_vm11 = vcmp.eq.f32.partialorder %v1398_v49, 8.507059e+37  ;;  %vm3390_vm12 = vcmp.eq.f32.partialorder %v1368_v56, 8.507059e+37 }
 0x3a4   :  { %v1338_v10 = vor.u32 1.1754944e-38, %v1337_v54  ;;  %vm3398_vm13 = vcmp.eq.f32.partialorder %v1335_v61, 8.507059e+37 }
 0x3a6   :  { %v2328_v42 = vpop.eup %2327 }
 0x3a7   :  { %v2330_v43 = vpop.eup %2329  ;;  %v1390_v44 = vmul.f32 %v2328_v42, %v1388_v39  ;;  %vm1395_vm5 = vweird.f32 %v2328_v42 }
 0x3a8   :  { %v2332_v45 = vpop.eup %2331  ;;  %v1360_v47 = vmul.f32 %v2330_v43, %v1358_v40  ;;  %v3375_v48 = vpop.xlane.xlu1 %1447  ;;  %vm1365_vm8 = vweird.f32 %v2330_v43  ;;  %vm3382_vm9 = vmor %vm1394_vm4, %vm1395_vm5 }
 0x3a9   :  { %v1391_v50 = vsub.f32 1.0, %v1390_v44  ;;  %v1327_v51 = vmul.f32 %v2332_v45, %v1325_v41  ;;  %v3377_v53 = vpop.xlane.xlu0 %1417  ;;  %2333 = vrcp.f32 %v3375_v48  ;;  %vm1332_vm10 = vweird.f32 %v2332_v45  ;;  %vm3404_vm14 = vmor %vm1364_vm7, %vm1365_vm8 }
 0x3aa   :  { %v1361_v55 = vsub.f32 1.0, %v1360_v47  ;;  %2335 = vrcp.f32 %v3377_v53  ;;  %vm1424_vm15 = vweird.f32 %v3377_v53  ;;  %v1430_v17 = vand.u32 2147483648, %v3377_v53  ;;  %vm1333_vm0 = vmor %vm1331_vm6, %vm1332_vm10 }
 0x3ab   :  { %v1392_v57 = vmul.f32 %v2328_v42, %v1391_v50  ;;  %v1328_v58 = vsub.f32 1.0, %v1327_v51  ;;  %v1460_v21 = vand.u32 2147483648, %v3375_v48  ;;  %v1458_v25 = vand.u32 2147483647, %v3375_v48 }
 0x3ac   :  { %v1362_v63 = vmul.f32 %v2330_v43, %v1361_v55  ;;  %vm1454_vm5 = vweird.f32 %v3375_v48  ;;  %v1428_v41 = vand.u32 2147483647, %v3377_v53  ;;  %v1431_v47 = vor.u32 1.1754944e-38, %v1430_v17 }
 0x3ad   :  { %v1329_v0 = vmul.f32 %v2332_v45, %v1328_v58  ;;  %v1393_v2 = vadd.f32 %v2328_v42, %v1392_v57  ;;  %vm1459_vm8 = vcmp.eq.f32.partialorder %v1458_v25, 8.507059e+37 }
 0x3ae   :  { %v1363_v6 = vadd.f32 %v2330_v43, %v1362_v63 }
 0x3af   :  { %v2334_v9 = vpop.eup %2333  ;;  %v3394_v11 = vpop.xlane.xlu2 %1477  ;;  %v1397_v12 = vsel %vm3382_vm9, %v2328_v42, %v1393_v2  ;;  %v1330_v13 = vadd.f32 %v2332_v45, %v1329_v0  ;;  %vm1429_vm9 = vcmp.eq.f32.partialorder %v1428_v41, 8.507059e+37 }
 0x3b0   :  { %v2336_v15 = vpop.eup %2335  ;;  %v1450_v18 = vmul.f32 %v2334_v9, %v3375_v48  ;;  %2337 = vrcp.f32 %v3394_v11  ;;  %v1402_v23 = vsel %vm3386_vm11, %v1401_v62, %v1397_v12  ;;  %v1367_v30 = vsel %vm3404_vm14, %v2330_v43, %v1363_v6 }
 0x3b1   :  { %v1420_v20 = vmul.f32 %v2336_v15, %v3377_v53  ;;  %v1403_v28 = vmul.f32 %v3349_v22, %v1402_v23  ;;  %v1334_v29 = vsel %vm1333_vm0, %v2332_v45, %v1330_v13  ;;  %vm1455_vm1 = vweird.f32 %v2334_v9 }
 0x3b2   :  { %v1451_v26 = vsub.f32 1.0, %v1450_v18  ;;  %v1339_v33 = vsel %vm3398_vm13, %v1338_v10, %v1334_v29  ;;  %v1372_v35 = vsel %vm3390_vm12, %v1371_v1, %v1367_v30  ;;  %vm1425_vm4 = vweird.f32 %v2336_v15  ;;  %vm3440_vm6 = vmor %vm1454_vm5, %vm1455_vm1 }
 0x3b3   :  { %v1421_v31 = vsub.f32 1.0, %v1420_v20  ;;  %v1404_v38 = vmul.f32 %v3415_v19, %v1403_v28  ;;  %v1340_v39 = vmul.f32 %v3355_v27, %v1339_v33  ;;  %v1373_v40 = vmul.f32 %v3351_v24, %v1372_v35  ;;  %vm1426_vm7 = vmor %vm1424_vm15, %vm1425_vm4 }
 0x3b4   :  { %v1452_v36 = vmul.f32 %v2334_v9, %v1451_v26  ;;  %v1461_v24 = vor.u32 1.1754944e-38, %v1460_v21  ;;  %v1490_v57 = vand.u32 2147483648, %v3394_v11  ;;  %v1488_v63 = vand.u32 2147483647, %v3394_v11 }
 0x3b5   :  { %v1422_v22 = vmul.f32 %v2336_v15, %v1421_v31  ;;  %v1405_v43 = vsel %vm1316_vm3, %v1404_v38, 0.0  ;;  %v1344_v44 = vmul.f32 %v3415_v19, %v1340_v39  ;;  %v1374_v45 = vmul.f32 %v3415_v19, %v1373_v40 }
 0x3b6   :  { %v2338_v42 = vpop.eup %2337  ;;  %v1453_v46 = vadd.f32 %v2334_v9, %v1452_v36  ;;  %1406 = vadd.xlane.f32.xlu2 %v1405_v43  ;;  %vm1484_vm11 = vweird.f32 %v3394_v11  ;;  %v1491_v4 = vor.u32 1.1754944e-38, %v1490_v57  ;;  %vm1489_vm13 = vcmp.eq.f32.partialorder %v1488_v63, 8.507059e+37 }
 0x3b7   :  { %v1480_v49 = vmul.f32 %v2338_v42, %v3394_v11  ;;  %v1423_v48 = vadd.f32 %v2336_v15, %v1422_v22  ;;  %v1345_v50 = vsel %vm1316_vm3, %v1344_v44, 0.0  ;;  %v1375_v51 = vsel %vm1316_vm3, %v1374_v45, 0.0  ;;  %v1504_v11 = vpop.permute.xlu2 %1503 }
 0x3b8   :  { %v1457_v52 = vsel %vm3440_vm6, %v2334_v9, %v1453_v46  ;;  %1346 = vadd.xlane.f32.xlu0 %v1345_v50  ;;  %1376 = vadd.xlane.f32.xlu1 %v1375_v51  ;;  %vm1485_vm10 = vweird.f32 %v2338_v42  ;;  %vm1529_vm14 = vcmask 408576   ;;  %vm1532_vm15 = vcmask 15360  }
 0x3b9   :  { %v1481_v54 = vsub.f32 1.0, %v1480_v49  ;;  %v1427_v55 = vsel %vm1426_vm7, %v2336_v15, %v1423_v48  ;;  %v1462_v56 = vsel %vm1459_vm8, %v1461_v24, %v1457_v52  ;;  %vm1486_vm12 = vmor %vm1484_vm11, %vm1485_vm10  ;;  %vm1534_vm0 = vcmask 23552  }
 0x3ba   :  { %v1432_v58 = vsel %vm1429_vm9, %v1431_v47, %v1427_v55  ;;  %v1463_v53 = vmul.f32 %v3364_v34, %v1462_v56  ;;  %vm1536_vm1 = vcmask 31744   ;;  %vm1538_vm4 = vcmask 39936  }
 0x3bb   :  { %v1482_v61 = vmul.f32 %v2338_v42, %v1481_v54  ;;  %v1433_v62 = vmul.f32 %v3362_v32, %v1432_v58  ;;  %vm1540_vm5 = vcmask 48128   ;;  %vm1523_vm6 = vcmask 621568  }
 0x3bc   :  { %v1464_v0 = vmul.f32 %v3415_v19, %v1463_v53  ;;  %v1508_v12 = vpop.permute.xlu0 %1507  ;;  %vm1525_vm7 = vcmask 1039360   ;;  %vm1519_vm8 = vcmask 834560  }
 0x3bd   :  { %v1434_v1 = vmul.f32 %v3415_v19, %v1433_v62  ;;  %v1483_v2 = vadd.f32 %v2338_v42, %v1482_v61 }
 0x3be   :  { %v1465_v5 = vsel %vm1316_vm3, %v1464_v0, 0.0 }
 0x3bf   :  { %v1435_v6 = vsel %vm1316_vm3, %v1434_v1, 0.0  ;;  %v1487_v34 = vsel %vm1486_vm12, %v2338_v42, %v1483_v2 }
 0x3c0   :  { %v1492_v8 = vsel %vm1489_vm13, %v1491_v4, %v1487_v34  ;;  %1436 = vadd.xlane.f32.xlu0 %v1435_v6  ;;  %1466 = vadd.xlane.f32.xlu1 %v1465_v5 }
 0x3c1   :  { %v1493_v32 = vmul.f32 %v3370_v37, %v1492_v8 }
 0x3c3   :  { %v1494_v9 = vmul.f32 %v3415_v19, %v1493_v32 }
 0x3c5   :  { %v1495_v10 = vsel %vm1316_vm3, %v1494_v9, 0.0 }
 0x3c8   :  { %1496 = vadd.xlane.f32.xlu1 %v1495_v10 }
 0x3ce   :  { %1515 = vrot.lane.b32.xlu2 %v3341_v7, %s2398_s11 }
 0x3d4   :  { %1511 = vrot.lane.b32.xlu0 %v3336_v3, %s2399_s15 }
 0x3e1   :  { %1499 = vrot.lane.b32.xlu1 %v3326_v59, %s2400_s5 }
 0x429   :  { %v1407_v13 = vpop.xlane.xlu2 %1406 }
 0x42b   :  { %v1347_v14 = vpop.xlane.xlu0 %1346  ;;  %v1377_v15 = vpop.xlane.xlu1 %1376 }
 0x42c   :  { %v1531_v17 = vsel %vm1308_vm2, %v1347_v14, %v1377_v15  ;;  %vm1521_vm2 = vcmask 203776  }
 0x42d   :  { %v1533_v18 = vsel %vm1532_vm15, %v1531_v17, %v1407_v13  ;;  %v1522_v21 = vsel %vm1521_vm2, %v1504_v11, %v1508_v12 }
 0x431   :  { %v1516_v37 = vpop.permute.xlu2 %1515 }
 0x432   :  { %1530 = vst.msk [vmem:[#allocation2 + $0x10] sm:$0xff] %vm1529_vm14, %v1516_v37 }
 0x433   :  { %v1467_v16 = vpop.xlane.xlu1 %1466  ;;  %v1437_v7 = vpop.xlane.xlu0 %1436 }
 0x434   :  { %v1535_v19 = vsel %vm1534_vm0, %v1533_v18, %v1437_v7 }
 0x435   :  { %v1537_v59 = vsel %vm1536_vm1, %v1535_v19, %v1467_v16 }
 0x43b   :  { %v1497_v3 = vpop.xlane.xlu1 %1496 }
 0x43c   :  { %v1539_v20 = vsel %vm1538_vm4, %v1537_v59, %v1497_v3 }
 0x43d   :  { %1541 = vst.msk [vmem:[#allocation4] sm:$0xff] %vm1540_vm5, %v1539_v20 }
 0x43e   :  { %1563 = dma.vmem_to_hbm [thread:$0]  %s1559_s17, 128, %s1561_s1, [#allocation5]  }
 0x446   :  { %v1512_v23 = vpop.permute.xlu0 %1511 }
 0x447   :  { %v1524_v25 = vsel %vm1523_vm6, %v1522_v21, %v1512_v23 }
 0x448   :  { %v1526_v26 = vsel %vm1525_vm7, %v1524_v25, %v1516_v37 }
 0x449   :  { %1528 = vst [vmem:[#allocation2 + $0x8] sm:$0xff] %v1526_v26 }
 0x453   :  { %v1500_v28 = vpop.permute.xlu1 %1499 }
 0x454   :  { %v1518_v29 = vsel %vm1316_vm3, %v3328_v60, %v1500_v28 }
 0x455   :  { %v1520_v30 = vsel %vm1519_vm8, %v1518_v29, %v1504_v11 }
 0x456   :  { %1527 = vst [vmem:[#allocation2] sm:$0xff] %v1520_v30 }
 0x457   :  { %1552 = dma.vmem_to_hbm [thread:$0]  %s1548_s19, 384, %s1550_s21, [#allocation3]  }
 0x458   :  { %2387 = dma.done.wait [#allocation3], 384  }
 0x459   :  { %2388 = vsyncadd [#allocation3], 4294966912 }
 0x45a   :  { %2389 = dma.done.wait [#allocation5], 128  }
 0x45b   :  { %2390 = vsyncadd [#allocation5], 4294967168 }
 0x45c   :  { %1572 = vsyncpa [#allocation3], 1 }
 0x45d   :  { %1573 = vsyncpa [#allocation5], 1 }

</bundles_post_ra>
